<compile_context>
chip_gen: v5e
topology: v5e:2x2
jax: 0.10.0
libtpu: 0.0.40
codegen_flags: <defaults>
</compile_context>

<pallas_src>
import math

import jax
import jax.numpy as jnp
from jax.experimental import pallas as pl
from jax.experimental.pallas import tpu as pltpu

# ---------------- config (small, consistent with the module) ----------------
B = 2                      # batch
S = 8                      # sequence length
HIDDEN = 32                # config.hidden_size
INTRA = 16                 # config.intra_bottleneck_size
NUM_HEADS = 4              # config.num_attention_heads
HEAD_DIM = INTRA // NUM_HEADS
FF = 64                    # config.intermediate_size
NUM_FFN = 1                # config.num_feedforward_networks - 1
NUM_LAYERS = 2             # config.num_hidden_layers

LANE = 128                 # all feature dims / slabs padded to lane width

# ----------------- packed parameter slab layout (per layer) -----------------
# weight slab: NUM_W stacked (LANE, LANE) zero-padded matrices (y = x @ W + b)
W_BN_IN, W_BN_ATT, W_Q, W_K, W_V, W_AO = 0, 1, 2, 3, 4, 5
def W_FFN_I(f): return 6 + 2 * f
def W_FFN_O(f): return 7 + 2 * f
W_INT = 6 + 2 * NUM_FFN
W_OUT = W_INT + 1
W_BO = W_INT + 2
NUM_W = W_BO + 1

# bias slab: one (1, LANE) zero-padded row per bias / FakeLayerNorm vector
B_BN_IN, B_BN_IN_LNW, B_BN_IN_LNB = 0, 1, 2
B_BN_ATT, B_BN_ATT_LNW, B_BN_ATT_LNB = 3, 4, 5
B_Q, B_K, B_V = 6, 7, 8
B_AO, B_AO_LNW, B_AO_LNB = 9, 10, 11
def B_FFN_I(f): return 12 + 4 * f
def B_FFN_O(f): return 13 + 4 * f
def B_FFN_LNW(f): return 14 + 4 * f
def B_FFN_LNB(f): return 15 + 4 * f
B_INT = 12 + 4 * NUM_FFN
B_OUT, B_OUT_LNW, B_OUT_LNB = B_INT + 1, B_INT + 2, B_INT + 3
B_BO, B_BO_LNW, B_BO_LNB = B_INT + 4, B_INT + 5, B_INT + 6
NUM_B = B_BO_LNB + 1
B_ROWS = ((NUM_B + 7) // 8) * 8       # pad bias-slab rows to sublane multiple


def _act(x):
    return jnp.maximum(x, 0.0)        # relu (MobileBERT hidden_act)


# ------------------------------ Pallas kernel -------------------------------
def make_encoder_kernel(batch, seq, num_ffn, num_heads, head_dim):
    rows = batch * seq
    scale = 1.0 / math.sqrt(float(head_dim))

    def kernel(x_ref, mask_ref, wslab_ref, bslab_ref, out_ref, state_ref):
        layer = pl.program_id(0)

        # hidden state lives in VMEM scratch across the layer grid axis
        @pl.when(layer == 0)
        def _():
            state_ref[...] = x_ref[...]

        def weight(i):                      # (LANE, LANE), zero padded
            return wslab_ref[0, i * LANE:(i + 1) * LANE, :]

        def bvec(i):                        # (1, LANE), zero padded
            return bslab_ref[0, i:i + 1, :]

        def linear(x, wi, bi):
            return jnp.dot(x, weight(wi),
                           preferred_element_type=jnp.float32) + bvec(bi)

        def fake_ln(y, wi, bi):             # FakeBertLayerNorm: w * y + b
            return bvec(wi) * y + bvec(bi)

        x = state_ref[...]                  # (rows, LANE); lanes >= HIDDEN are 0
        mask = mask_ref[...]                # (B, 1, S) additive attention mask

        # ---- BottleneckShrink ----
        layer_input = fake_ln(linear(x, W_BN_IN, B_BN_IN),
                              B_BN_IN_LNW, B_BN_IN_LNB)
        sai = fake_ln(linear(x, W_BN_ATT, B_BN_ATT),
                      B_BN_ATT_LNW, B_BN_ATT_LNB)

        # ---- BertSelfAttention (q/k from bottleneck, v from hidden) ----
        q = linear(sai, W_Q, B_Q)           # (rows, LANE), first INTRA lanes valid
        k = linear(sai, W_K, B_K)
        v = linear(x, W_V, B_V)

        # Per-head attention batched over the batch dim; the per-head context
        # is folded straight into the BertSelfOutput dense projection:
        #   ctx @ W_ao == sum_h ctx_h @ W_ao[h*hd:(h+1)*hd, :]
        ao_w = weight(W_AO)
        self_out = jnp.zeros((rows, LANE), jnp.float32)
        for h in range(num_heads):
            lo, hi = h * head_dim, (h + 1) * head_dim
            qh = q[:, lo:hi].reshape(batch, seq, head_dim)
            kh = k[:, lo:hi].reshape(batch, seq, head_dim)
            vh = v[:, lo:hi].reshape(batch, seq, head_dim)
            s = jnp.einsum('bqd,bkd->bqk', qh, kh,
                           preferred_element_type=jnp.float32) * scale
            s = s + mask                                   # (B,S,S) + (B,1,S)
            s = s - jnp.max(s, axis=-1, keepdims=True)
            e = jnp.exp(s)
            p = e / jnp.sum(e, axis=-1, keepdims=True)
            ctx_h = jnp.einsum('bqk,bkd->bqd', p, vh,
                               preferred_element_type=jnp.float32)
            self_out = self_out + jnp.dot(ctx_h.reshape(rows, head_dim),
                                          ao_w[lo:hi, :],
                                          preferred_element_type=jnp.float32)
        self_out = self_out + bvec(B_AO)

        # ---- BertSelfOutput ----
        attn = fake_ln(self_out + layer_input, B_AO_LNW, B_AO_LNB)

        # ---- FFN stack ----
        for f in range(num_ffn):
            inter = _act(linear(attn, W_FFN_I(f), B_FFN_I(f)))
            attn = fake_ln(linear(inter, W_FFN_O(f), B_FFN_O(f)) + attn,
                           B_FFN_LNW(f), B_FFN_LNB(f))

        # ---- BertIntermediate + BertOutput + Bottleneckoutput ----
        inter = _act(linear(attn, W_INT, B_INT))
        h1 = fake_ln(linear(inter, W_OUT, B_OUT) + attn, B_OUT_LNW, B_OUT_LNB)
        new_x = fake_ln(linear(h1, W_BO, B_BO) + x, B_BO_LNW, B_BO_LNB)

        state_ref[...] = new_x
        out_ref[...] = new_x

    return kernel


def bert_encoder_pallas(hidden, mask, wslab, bslab):
    """hidden: (B,S,H) f32, mask: (B,1,S) additive f32, packed param slabs."""
    Bc, Sc, Hc = hidden.shape
    rows = Bc * Sc
    x = jnp.pad(hidden.reshape(rows, Hc).astype(jnp.float32),
                ((0, 0), (0, LANE - Hc)))            # lane-dense, zero padded

    kernel = make_encoder_kernel(Bc, Sc, NUM_FFN, NUM_HEADS, HEAD_DIM)

    out = pl.pallas_call(
        kernel,
        out_shape=jax.ShapeDtypeStruct((rows, LANE), jnp.float32),
        grid=(NUM_LAYERS,),
        in_specs=[
            pl.BlockSpec((rows, LANE), lambda l: (0, 0)),          # tokens
            pl.BlockSpec((Bc, 1, Sc), lambda l: (0, 0, 0)),        # mask
            pl.BlockSpec((1, NUM_W * LANE, LANE), lambda l: (l, 0, 0)),  # weights
            pl.BlockSpec((1, B_ROWS, LANE), lambda l: (l, 0, 0)),        # biases
        ],
        out_specs=pl.BlockSpec((rows, LANE), lambda l: (0, 0)),    # lane-dense
        scratch_shapes=[pltpu.VMEM((rows, LANE), jnp.float32)],    # hidden carry
        compiler_params=pltpu.CompilerParams(
            dimension_semantics=("arbitrary",)),                   # sequential layers
    )(x, mask, wslab, bslab)

    return out[:, :Hc].reshape(Bc, Sc, Hc)


# --------------------------- parameter construction -------------------------
def init_layer_params(key):
    """Deterministic init; Linear weights ~ 0.05*N(0,1), biases ~ 0.02*N(0,1),
    FakeLayerNorm weight=1, bias=0.  Weights stored (in_features, out_features)."""
    ks = iter(jax.random.split(key, 64))

    def lin(din, dout):
        w = 0.05 * jax.random.normal(next(ks), (din, dout), jnp.float32)
        b = 0.02 * jax.random.normal(next(ks), (1, dout), jnp.float32)
        return w, b

    def fln(d):
        return jnp.ones((1, d), jnp.float32), jnp.zeros((1, d), jnp.float32)

    flat = []
    w, b = lin(HIDDEN, INTRA); lw, lb = fln(INTRA); flat += [w, b, lw, lb]   # BottleneckShrinkInput
    w, b = lin(HIDDEN, INTRA); lw, lb = fln(INTRA); flat += [w, b, lw, lb]   # BottleneckShrinkAttention
    qw, qb = lin(INTRA, INTRA); kw, kb = lin(INTRA, INTRA); vw, vb = lin(HIDDEN, INTRA)
    flat += [qw, qb, kw, kb, vw, vb]                                         # self-attention
    w, b = lin(INTRA, INTRA); lw, lb = fln(INTRA); flat += [w, b, lw, lb]    # BertSelfOutput
    for _ in range(NUM_FFN):                                                 # FFN layers
        iw, ib = lin(INTRA, HIDDEN)
        ow, ob = lin(HIDDEN, INTRA)
        lw, lb = fln(INTRA)
        flat += [iw, ib, ow, ob, lw, lb]
    w, b = lin(INTRA, FF); flat += [w, b]                                    # BertIntermediate
    w, b = lin(FF, INTRA); lw, lb = fln(INTRA); flat += [w, b, lw, lb]       # BertOutput
    w, b = lin(INTRA, HIDDEN); lw, lb = fln(HIDDEN); flat += [w, b, lw, lb]  # Bottleneckoutput
    return flat


def pack_layer_params(flat):
    (bn_in_w, bn_in_b, bn_in_lnw, bn_in_lnb,
     bn_att_w, bn_att_b, bn_att_lnw, bn_att_lnb,
     q_w, q_b, k_w, k_b, v_w, v_b,
     ao_w, ao_b, ao_lnw, ao_lnb) = flat[:18]
    ffn = [flat[18 + 6 * i: 18 + 6 * (i + 1)] for i in range(NUM_FFN)]
    (int_w, int_b, out_w, out_b, out_lnw, out_lnb,
     bo_w, bo_b, bo_lnw, bo_lnb) = flat[18 + 6 * NUM_FFN:]

    def pad_w(w):
        return jnp.zeros((LANE, LANE), jnp.float32).at[:w.shape[0], :w.shape[1]].set(w)

    def pad_b(v):
        return jnp.zeros((1, LANE), jnp.float32).at[:, :v.shape[1]].set(v)

    weights = [bn_in_w, bn_att_w, q_w, k_w, v_w, ao_w]
    biases = [bn_in_b, bn_in_lnw, bn_in_lnb,
              bn_att_b, bn_att_lnw, bn_att_lnb,
              q_b, k_b, v_b,
              ao_b, ao_lnw, ao_lnb]
    for (iw, ib, ow, ob, lw, lb) in ffn:
        weights += [iw, ow]
        biases += [ib, ob, lw, lb]
    weights += [int_w, out_w, bo_w]
    biases += [int_b, out_b, out_lnw, out_lnb, bo_b, bo_lnw, bo_lnb]

    assert len(weights) == NUM_W and len(biases) == NUM_B
    wslab = jnp.concatenate([pad_w(w) for w in weights], axis=0)          # (NUM_W*LANE, LANE)
    bslab = jnp.concatenate([pad_b(v) for v in biases]
                            + [jnp.zeros((B_ROWS - NUM_B, LANE), jnp.float32)],
                            axis=0)                                       # (B_ROWS, LANE)
    return wslab, bslab


def pack_encoder_params(layers_params):
    packed = [pack_layer_params(flat) for flat in layers_params]
    wslab = jnp.stack([p[0] for p in packed])    # (L, NUM_W*LANE, LANE)
    bslab = jnp.stack([p[1] for p in packed])    # (L, B_ROWS, LANE)
    return wslab, bslab


# ----------------------------- pure-JAX reference ---------------------------
def layer_ref(x, mask, flat):
    (bn_in_w, bn_in_b, bn_in_lnw, bn_in_lnb,
     bn_att_w, bn_att_b, bn_att_lnw, bn_att_lnb,
     q_w, q_b, k_w, k_b, v_w, v_b,
     ao_w, ao_b, ao_lnw, ao_lnb) = flat[:18]
    ffn = [flat[18 + 6 * i: 18 + 6 * (i + 1)] for i in range(NUM_FFN)]
    (int_w, int_b, out_w, out_b, out_lnw, out_lnb,
     bo_w, bo_b, bo_lnw, bo_lnb) = flat[18 + 6 * NUM_FFN:]

    Bc, Sc, Hc = x.shape
    li = bn_in_lnw * (x @ bn_in_w + bn_in_b) + bn_in_lnb
    sai = bn_att_lnw * (x @ bn_att_w + bn_att_b) + bn_att_lnb

    q = (sai @ q_w + q_b).reshape(Bc, Sc, NUM_HEADS, HEAD_DIM).transpose(0, 2, 1, 3)
    k = (sai @ k_w + k_b).reshape(Bc, Sc, NUM_HEADS, HEAD_DIM).transpose(0, 2, 1, 3)
    v = (x @ v_w + v_b).reshape(Bc, Sc, NUM_HEADS, HEAD_DIM).transpose(0, 2, 1, 3)
    s = jnp.einsum('bhqd,bhkd->bhqk', q, k) / math.sqrt(float(HEAD_DIM))
    s = s + mask[:, None, :, :]
    p = jax.nn.softmax(s, axis=-1)
    ctx = jnp.einsum('bhqk,bhkd->bhqd', p, v).transpose(0, 2, 1, 3).reshape(Bc, Sc, INTRA)

    attn = ao_lnw * (ctx @ ao_w + ao_b + li) + ao_lnb
    for (iw, ib, ow, ob, lw, lb) in ffn:
        inter = _act(attn @ iw + ib)
        attn = lw * (inter @ ow + ob + attn) + lb
    inter = _act(attn @ int_w + int_b)
    h = out_lnw * (inter @ out_w + out_b + attn) + out_lnb
    return bo_lnw * (h @ bo_w + bo_b + x) + bo_lnb


def encoder_ref(x, mask, layers_params):
    for flat in layers_params:
        x = layer_ref(x, mask, flat)
    return x


# ---------------------------------- main -------------------------------------
if __name__ == "__main__":
    key = jax.random.PRNGKey(0)
    k_x, k_m, *k_layers = jax.random.split(key, 2 + NUM_LAYERS)

    hidden = jax.random.normal(k_x, (B, S, HIDDEN), jnp.float32)
    # additive attention mask (B,1,S): 0 = attend, -1e4 = masked (last pos of batch 1)
    mask = jnp.zeros((B, 1, S), jnp.float32)
    mask = mask.at[1, 0, S - 1].set(-1e4)

    layers_params = [init_layer_params(k) for k in k_layers]
    wslab, bslab = pack_encoder_params(layers_params)

    out = bert_encoder_pallas(hidden, mask, wslab, bslab)
    out = jax.block_until_ready(out)

    ref = encoder_ref(hidden, mask, layers_params)
    assert out.shape == (B, S, HIDDEN)
    assert jnp.allclose(out, ref, atol=1e-4, rtol=1e-4), "mismatch vs JAX reference"

    print("KERNEL_OK")
</pallas_src>

<mosaic_0001>
module attributes {stable_mosaic.version = 11 : i64} {
  func.func @kernel(%arg0: i32, %arg1: memref<16x128xf32, #tpu.memory_space<vmem>>, %arg2: memref<2x1x8xf32, #tpu.memory_space<vmem>>, %arg3: memref<1x1408x128xf32, #tpu.memory_space<vmem>>, %arg4: memref<1x24x128xf32, #tpu.memory_space<vmem>>, %arg5: memref<16x128xf32, #tpu.memory_space<vmem>>, %arg6: memref<16x128xf32, #tpu.memory_space<vmem>>) attributes {dimension_semantics = [#tpu.dimension_semantics<arbitrary>], iteration_bounds = array<i64: 2>, scalar_prefetch = 0 : i64, scratch_operands = 1 : i64, tpu.core_type = #tpu.core_type<tc>, window_params = [{pipeline_mode = #tpu.pipeline_mode<synchronous>, transform_indices = @transform_0, window_bounds = array<i64: 16, 128>}, {pipeline_mode = #tpu.pipeline_mode<synchronous>, transform_indices = @transform_1, window_bounds = array<i64: 2, 1, 8>}, {transform_indices = @transform_2, window_bounds = array<i64: 1, 1408, 128>}, {transform_indices = @transform_3, window_bounds = array<i64: 1, 24, 128>}, {pipeline_mode = #tpu.pipeline_mode<synchronous>, transform_indices = @transform_4, window_bounds = array<i64: 16, 128>}]} {
    %c0_i32 = arith.constant 0 : i32
    %0 = arith.cmpi eq, %arg0, %c0_i32 : i32
    %1 = arith.extui %0 : i1 to i32
    %c0_i32_0 = arith.constant 0 : i32
    %2 = arith.cmpi ne, %1, %c0_i32_0 : i32
    scf.if %2 {
      %c0_115 = arith.constant 0 : index
      %c0_116 = arith.constant 0 : index
      %240 = vector.load %arg1[%c0_115, %c0_116] : memref<16x128xf32, #tpu.memory_space<vmem>>, vector<16x128xf32>
      %c0_117 = arith.constant 0 : index
      %c0_118 = arith.constant 0 : index
      %241 = vector.load %arg6[%c0_117, %c0_118] : memref<16x128xf32, #tpu.memory_space<vmem>>, vector<16x128xf32>
      tpu.vector_store %arg6[%c0_117, %c0_118], %240 {strides = array<i32>} : memref<16x128xf32, #tpu.memory_space<vmem>>, vector<16x128xf32>,
    } else {
    }
    %c0 = arith.constant 0 : index
    %c0_1 = arith.constant 0 : index
    %3 = vector.load %arg6[%c0, %c0_1] : memref<16x128xf32, #tpu.memory_space<vmem>>, vector<16x128xf32>
    %c0_2 = arith.constant 0 : index
    %c0_3 = arith.constant 0 : index
    %c0_4 = arith.constant 0 : index
    %4 = vector.load %arg2[%c0_2, %c0_3, %c0_4] : memref<2x1x8xf32, #tpu.memory_space<vmem>>, vector<2x1x8xf32>
    %c0_5 = arith.constant 0 : index
    %c0_6 = arith.constant 0 : index
    %c0_7 = arith.constant 0 : index
    %5 = vector.load %arg3[%c0_5, %c0_6, %c0_7] : memref<1x1408x128xf32, #tpu.memory_space<vmem>>, vector<1x128x128xf32>
    %6 = vector.shape_cast %5 : vector<1x128x128xf32> to vector<128x128xf32>
    %cst = arith.constant dense<0.000000e+00> : vector<16x128xf32>
    %7 = tpu.matmul %3, %6, %cst {dimension_numbers = #tpu.dot_dimension_numbers<[1], [0], [0], [1], [0, 0, 1, 1], [], []>} : vector<16x128xf32>, vector<128x128xf32>, vector<16x128xf32> -> vector<16x128xf32>
    %c0_8 = arith.constant 0 : index
    %c0_9 = arith.constant 0 : index
    %c0_10 = arith.constant 0 : index
    %8 = vector.load %arg4[%c0_8, %c0_9, %c0_10] : memref<1x24x128xf32, #tpu.memory_space<vmem>>, vector<1x1x128xf32>
    %9 = vector.shape_cast %8 : vector<1x1x128xf32> to vector<1x128xf32>
    %10 = vector.broadcast %9 : vector<1x128xf32> to vector<16x128xf32>
    %11 = arith.addf %7, %10 : vector<16x128xf32>
    %c0_11 = arith.constant 0 : index
    %c1 = arith.constant 1 : index
    %c0_12 = arith.constant 0 : index
    %12 = vector.load %arg4[%c0_11, %c1, %c0_12] : memref<1x24x128xf32, #tpu.memory_space<vmem>>, vector<1x1x128xf32>
    %13 = vector.shape_cast %12 : vector<1x1x128xf32> to vector<1x128xf32>
    %14 = vector.broadcast %13 : vector<1x128xf32> to vector<16x128xf32>
    %15 = arith.mulf %14, %11 : vector<16x128xf32>
    %c0_13 = arith.constant 0 : index
    %c2 = arith.constant 2 : index
    %c0_14 = arith.constant 0 : index
    %16 = vector.load %arg4[%c0_13, %c2, %c0_14] : memref<1x24x128xf32, #tpu.memory_space<vmem>>, vector<1x1x128xf32>
    %17 = vector.shape_cast %16 : vector<1x1x128xf32> to vector<1x128xf32>
    %18 = vector.broadcast %17 : vector<1x128xf32> to vector<16x128xf32>
    %19 = arith.addf %15, %18 : vector<16x128xf32>
    %c0_15 = arith.constant 0 : index
    %c128 = arith.constant 128 : index
    %c0_16 = arith.constant 0 : index
    %20 = vector.load %arg3[%c0_15, %c128, %c0_16] : memref<1x1408x128xf32, #tpu.memory_space<vmem>>, vector<1x128x128xf32>
    %21 = vector.shape_cast %20 : vector<1x128x128xf32> to vector<128x128xf32>
    %cst_17 = arith.constant dense<0.000000e+00> : vector<16x128xf32>
    %22 = tpu.matmul %3, %21, %cst_17 {dimension_numbers = #tpu.dot_dimension_numbers<[1], [0], [0], [1], [0, 0, 1, 1], [], []>} : vector<16x128xf32>, vector<128x128xf32>, vector<16x128xf32> -> vector<16x128xf32>
    %c0_18 = arith.constant 0 : index
    %c3 = arith.constant 3 : index
    %c0_19 = arith.constant 0 : index
    %23 = vector.load %arg4[%c0_18, %c3, %c0_19] : memref<1x24x128xf32, #tpu.memory_space<vmem>>, vector<1x1x128xf32>
    %24 = vector.shape_cast %23 : vector<1x1x128xf32> to vector<1x128xf32>
    %25 = vector.broadcast %24 : vector<1x128xf32> to vector<16x128xf32>
    %26 = arith.addf %22, %25 : vector<16x128xf32>
    %c0_20 = arith.constant 0 : index
    %c4 = arith.constant 4 : index
    %c0_21 = arith.constant 0 : index
    %27 = vector.load %arg4[%c0_20, %c4, %c0_21] : memref<1x24x128xf32, #tpu.memory_space<vmem>>, vector<1x1x128xf32>
    %28 = vector.shape_cast %27 : vector<1x1x128xf32> to vector<1x128xf32>
    %29 = vector.broadcast %28 : vector<1x128xf32> to vector<16x128xf32>
    %30 = arith.mulf %29, %26 : vector<16x128xf32>
    %c0_22 = arith.constant 0 : index
    %c5 = arith.constant 5 : index
    %c0_23 = arith.constant 0 : index
    %31 = vector.load %arg4[%c0_22, %c5, %c0_23] : memref<1x24x128xf32, #tpu.memory_space<vmem>>, vector<1x1x128xf32>
    %32 = vector.shape_cast %31 : vector<1x1x128xf32> to vector<1x128xf32>
    %33 = vector.broadcast %32 : vector<1x128xf32> to vector<16x128xf32>
    %34 = arith.addf %30, %33 : vector<16x128xf32>
    %c0_24 = arith.constant 0 : index
    %c256 = arith.constant 256 : index
    %c0_25 = arith.constant 0 : index
    %35 = vector.load %arg3[%c0_24, %c256, %c0_25] : memref<1x1408x128xf32, #tpu.memory_space<vmem>>, vector<1x128x128xf32>
    %36 = vector.shape_cast %35 : vector<1x128x128xf32> to vector<128x128xf32>
    %cst_26 = arith.constant dense<0.000000e+00> : vector<16x128xf32>
    %37 = tpu.matmul %34, %36, %cst_26 {dimension_numbers = #tpu.dot_dimension_numbers<[1], [0], [0], [1], [0, 0, 1, 1], [], []>} : vector<16x128xf32>, vector<128x128xf32>, vector<16x128xf32> -> vector<16x128xf32>
    %c0_27 = arith.constant 0 : index
    %c6 = arith.constant 6 : index
    %c0_28 = arith.constant 0 : index
    %38 = vector.load %arg4[%c0_27, %c6, %c0_28] : memref<1x24x128xf32, #tpu.memory_space<vmem>>, vector<1x1x128xf32>
    %39 = vector.shape_cast %38 : vector<1x1x128xf32> to vector<1x128xf32>
    %40 = vector.broadcast %39 : vector<1x128xf32> to vector<16x128xf32>
    %41 = arith.addf %37, %40 : vector<16x128xf32>
    %c0_29 = arith.constant 0 : index
    %c384 = arith.constant 384 : index
    %c0_30 = arith.constant 0 : index
    %42 = vector.load %arg3[%c0_29, %c384, %c0_30] : memref<1x1408x128xf32, #tpu.memory_space<vmem>>, vector<1x128x128xf32>
    %43 = vector.shape_cast %42 : vector<1x128x128xf32> to vector<128x128xf32>
    %cst_31 = arith.constant dense<0.000000e+00> : vector<16x128xf32>
    %44 = tpu.matmul %34, %43, %cst_31 {dimension_numbers = #tpu.dot_dimension_numbers<[1], [0], [0], [1], [0, 0, 1, 1], [], []>} : vector<16x128xf32>, vector<128x128xf32>, vector<16x128xf32> -> vector<16x128xf32>
    %c0_32 = arith.constant 0 : index
    %c7 = arith.constant 7 : index
    %c0_33 = arith.constant 0 : index
    %45 = vector.load %arg4[%c0_32, %c7, %c0_33] : memref<1x24x128xf32, #tpu.memory_space<vmem>>, vector<1x1x128xf32>
    %46 = vector.shape_cast %45 : vector<1x1x128xf32> to vector<1x128xf32>
    %47 = vector.broadcast %46 : vector<1x128xf32> to vector<16x128xf32>
    %48 = arith.addf %44, %47 : vector<16x128xf32>
    %c0_34 = arith.constant 0 : index
    %c512 = arith.constant 512 : index
    %c0_35 = arith.constant 0 : index
    %49 = vector.load %arg3[%c0_34, %c512, %c0_35] : memref<1x1408x128xf32, #tpu.memory_space<vmem>>, vector<1x128x128xf32>
    %50 = vector.shape_cast %49 : vector<1x128x128xf32> to vector<128x128xf32>
    %cst_36 = arith.constant dense<0.000000e+00> : vector<16x128xf32>
    %51 = tpu.matmul %3, %50, %cst_36 {dimension_numbers = #tpu.dot_dimension_numbers<[1], [0], [0], [1], [0, 0, 1, 1], [], []>} : vector<16x128xf32>, vector<128x128xf32>, vector<16x128xf32> -> vector<16x128xf32>
    %c0_37 = arith.constant 0 : index
    %c8 = arith.constant 8 : index
    %c0_38 = arith.constant 0 : index
    %52 = vector.load %arg4[%c0_37, %c8, %c0_38] : memref<1x24x128xf32, #tpu.memory_space<vmem>>, vector<1x1x128xf32>
    %53 = vector.shape_cast %52 : vector<1x1x128xf32> to vector<1x128xf32>
    %54 = vector.broadcast %53 : vector<1x128xf32> to vector<16x128xf32>
    %55 = arith.addf %51, %54 : vector<16x128xf32>
    %c0_39 = arith.constant 0 : index
    %c640 = arith.constant 640 : index
    %c0_40 = arith.constant 0 : index
    %56 = vector.load %arg3[%c0_39, %c640, %c0_40] : memref<1x1408x128xf32, #tpu.memory_space<vmem>>, vector<1x128x128xf32>
    %57 = vector.shape_cast %56 : vector<1x128x128xf32> to vector<128x128xf32>
    %cst_41 = arith.constant 0.000000e+00 : f32
    %58 = vector.broadcast %cst_41 : f32 to vector<16x128xf32>
    %59 = vector.extract_strided_slice %41 {offsets = [0, 0], sizes = [16, 4], strides = [1, 1]} : vector<16x128xf32> to vector<16x4xf32>
    %60 = vector.shape_cast %59 : vector<16x4xf32> to vector<2x8x4xf32>
    %61 = vector.extract_strided_slice %48 {offsets = [0, 0], sizes = [16, 4], strides = [1, 1]} : vector<16x128xf32> to vector<16x4xf32>
    %62 = vector.shape_cast %61 : vector<16x4xf32> to vector<2x8x4xf32>
    %63 = vector.extract_strided_slice %55 {offsets = [0, 0], sizes = [16, 4], strides = [1, 1]} : vector<16x128xf32> to vector<16x4xf32>
    %64 = vector.shape_cast %63 : vector<16x4xf32> to vector<2x8x4xf32>
    "tpu.trace_start"() <{level = 10 : i32, message = "bqd,bkd->bqk"}> : () -> ()
    %cst_42 = arith.constant dense<0.000000e+00> : vector<2x8x8xf32>
    %65 = tpu.matmul %60, %62, %cst_42 {dimension_numbers = #tpu.dot_dimension_numbers<[2], [2], [1], [1], [0, 0, 0, 1, 1, 1], [0], [0]>} : vector<2x8x4xf32>, vector<2x8x4xf32>, vector<2x8x8xf32> -> vector<2x8x8xf32>
    "tpu.trace_stop"() : () -> ()
    %cst_43 = arith.constant 5.000000e-01 : f32
    %66 = vector.broadcast %cst_43 : f32 to vector<2x8x8xf32>
    %67 = arith.mulf %65, %66 : vector<2x8x8xf32>
    %68 = vector.broadcast %4 : vector<2x1x8xf32> to vector<2x8x8xf32>
    %69 = arith.addf %67, %68 : vector<2x8x8xf32>
    %cst_44 = arith.constant dense<0xFF800000> : vector<2x8xf32>
    %70 = vector.multi_reduction <maximumf>, %69, %cst_44 [2] : vector<2x8x8xf32> to vector<2x8xf32>
    %71 = vector.shape_cast %70 : vector<2x8xf32> to vector<2x8x1xf32>
    %72 = vector.broadcast %71 : vector<2x8x1xf32> to vector<2x8x8xf32>
    %73 = arith.subf %69, %72 : vector<2x8x8xf32>
    %74 = math.exp %73 : vector<2x8x8xf32>
    %cst_45 = arith.constant dense<0.000000e+00> : vector<2x8xf32>
    %75 = vector.multi_reduction <add>, %74, %cst_45 [2] : vector<2x8x8xf32> to vector<2x8xf32>
    %76 = vector.shape_cast %75 : vector<2x8xf32> to vector<2x8x1xf32>
    %77 = vector.broadcast %76 : vector<2x8x1xf32> to vector<2x8x8xf32>
    %78 = arith.divf %74, %77 : vector<2x8x8xf32>
    "tpu.trace_start"() <{level = 10 : i32, message = "bqk,bkd->bqd"}> : () -> ()
    %cst_46 = arith.constant dense<0.000000e+00> : vector<2x8x4xf32>
    %79 = tpu.matmul %78, %64, %cst_46 {dimension_numbers = #tpu.dot_dimension_numbers<[2], [1], [1], [2], [0, 0, 0, 1, 1, 2], [0], [0]>} : vector<2x8x8xf32>, vector<2x8x4xf32>, vector<2x8x4xf32> -> vector<2x8x4xf32>
    "tpu.trace_stop"() : () -> ()
    %80 = vector.shape_cast %79 : vector<2x8x4xf32> to vector<16x4xf32>
    %81 = vector.extract_strided_slice %57 {offsets = [0, 0], sizes = [4, 128], strides = [1, 1]} : vector<128x128xf32> to vector<4x128xf32>
    %cst_47 = arith.constant dense<0.000000e+00> : vector<16x128xf32>
    %82 = tpu.matmul %80, %81, %cst_47 {dimension_numbers = #tpu.dot_dimension_numbers<[1], [0], [0], [1], [0, 0, 1, 1], [], []>} : vector<16x4xf32>, vector<4x128xf32>, vector<16x128xf32> -> vector<16x128xf32>
    %83 = arith.addf %58, %82 : vector<16x128xf32>
    %84 = vector.extract_strided_slice %41 {offsets = [0, 4], sizes = [16, 4], strides = [1, 1]} : vector<16x128xf32> to vector<16x4xf32>
    %85 = vector.shape_cast %84 : vector<16x4xf32> to vector<2x8x4xf32>
    %86 = vector.extract_strided_slice %48 {offsets = [0, 4], sizes = [16, 4], strides = [1, 1]} : vector<16x128xf32> to vector<16x4xf32>
    %87 = vector.shape_cast %86 : vector<16x4xf32> to vector<2x8x4xf32>
    %88 = vector.extract_strided_slice %55 {offsets = [0, 4], sizes = [16, 4], strides = [1, 1]} : vector<16x128xf32> to vector<16x4xf32>
    %89 = vector.shape_cast %88 : vector<16x4xf32> to vector<2x8x4xf32>
    "tpu.trace_start"() <{level = 10 : i32, message = "bqd,bkd->bqk"}> : () -> ()
    %cst_48 = arith.constant dense<0.000000e+00> : vector<2x8x8xf32>
    %90 = tpu.matmul %85, %87, %cst_48 {dimension_numbers = #tpu.dot_dimension_numbers<[2], [2], [1], [1], [0, 0, 0, 1, 1, 1], [0], [0]>} : vector<2x8x4xf32>, vector<2x8x4xf32>, vector<2x8x8xf32> -> vector<2x8x8xf32>
    "tpu.trace_stop"() : () -> ()
    %cst_49 = arith.constant 5.000000e-01 : f32
    %91 = vector.broadcast %cst_49 : f32 to vector<2x8x8xf32>
    %92 = arith.mulf %90, %91 : vector<2x8x8xf32>
    %93 = vector.broadcast %4 : vector<2x1x8xf32> to vector<2x8x8xf32>
    %94 = arith.addf %92, %93 : vector<2x8x8xf32>
    %cst_50 = arith.constant dense<0xFF800000> : vector<2x8xf32>
    %95 = vector.multi_reduction <maximumf>, %94, %cst_50 [2] : vector<2x8x8xf32> to vector<2x8xf32>
    %96 = vector.shape_cast %95 : vector<2x8xf32> to vector<2x8x1xf32>
    %97 = vector.broadcast %96 : vector<2x8x1xf32> to vector<2x8x8xf32>
    %98 = arith.subf %94, %97 : vector<2x8x8xf32>
    %99 = math.exp %98 : vector<2x8x8xf32>
    %cst_51 = arith.constant dense<0.000000e+00> : vector<2x8xf32>
    %100 = vector.multi_reduction <add>, %99, %cst_51 [2] : vector<2x8x8xf32> to vector<2x8xf32>
    %101 = vector.shape_cast %100 : vector<2x8xf32> to vector<2x8x1xf32>
    %102 = vector.broadcast %101 : vector<2x8x1xf32> to vector<2x8x8xf32>
    %103 = arith.divf %99, %102 : vector<2x8x8xf32>
    "tpu.trace_start"() <{level = 10 : i32, message = "bqk,bkd->bqd"}> : () -> ()
    %cst_52 = arith.constant dense<0.000000e+00> : vector<2x8x4xf32>
    %104 = tpu.matmul %103, %89, %cst_52 {dimension_numbers = #tpu.dot_dimension_numbers<[2], [1], [1], [2], [0, 0, 0, 1, 1, 2], [0], [0]>} : vector<2x8x8xf32>, vector<2x8x4xf32>, vector<2x8x4xf32> -> vector<2x8x4xf32>
    "tpu.trace_stop"() : () -> ()
    %105 = vector.shape_cast %104 : vector<2x8x4xf32> to vector<16x4xf32>
    %106 = vector.extract_strided_slice %57 {offsets = [4, 0], sizes = [4, 128], strides = [1, 1]} : vector<128x128xf32> to vector<4x128xf32>
    %cst_53 = arith.constant dense<0.000000e+00> : vector<16x128xf32>
    %107 = tpu.matmul %105, %106, %cst_53 {dimension_numbers = #tpu.dot_dimension_numbers<[1], [0], [0], [1], [0, 0, 1, 1], [], []>} : vector<16x4xf32>, vector<4x128xf32>, vector<16x128xf32> -> vector<16x128xf32>
    %108 = arith.addf %83, %107 : vector<16x128xf32>
    %109 = vector.extract_strided_slice %41 {offsets = [0, 8], sizes = [16, 4], strides = [1, 1]} : vector<16x128xf32> to vector<16x4xf32>
    %110 = vector.shape_cast %109 : vector<16x4xf32> to vector<2x8x4xf32>
    %111 = vector.extract_strided_slice %48 {offsets = [0, 8], sizes = [16, 4], strides = [1, 1]} : vector<16x128xf32> to vector<16x4xf32>
    %112 = vector.shape_cast %111 : vector<16x4xf32> to vector<2x8x4xf32>
    %113 = vector.extract_strided_slice %55 {offsets = [0, 8], sizes = [16, 4], strides = [1, 1]} : vector<16x128xf32> to vector<16x4xf32>
    %114 = vector.shape_cast %113 : vector<16x4xf32> to vector<2x8x4xf32>
    "tpu.trace_start"() <{level = 10 : i32, message = "bqd,bkd->bqk"}> : () -> ()
    %cst_54 = arith.constant dense<0.000000e+00> : vector<2x8x8xf32>
    %115 = tpu.matmul %110, %112, %cst_54 {dimension_numbers = #tpu.dot_dimension_numbers<[2], [2], [1], [1], [0, 0, 0, 1, 1, 1], [0], [0]>} : vector<2x8x4xf32>, vector<2x8x4xf32>, vector<2x8x8xf32> -> vector<2x8x8xf32>
    "tpu.trace_stop"() : () -> ()
    %cst_55 = arith.constant 5.000000e-01 : f32
    %116 = vector.broadcast %cst_55 : f32 to vector<2x8x8xf32>
    %117 = arith.mulf %115, %116 : vector<2x8x8xf32>
    %118 = vector.broadcast %4 : vector<2x1x8xf32> to vector<2x8x8xf32>
    %119 = arith.addf %117, %118 : vector<2x8x8xf32>
    %cst_56 = arith.constant dense<0xFF800000> : vector<2x8xf32>
    %120 = vector.multi_reduction <maximumf>, %119, %cst_56 [2] : vector<2x8x8xf32> to vector<2x8xf32>
    %121 = vector.shape_cast %120 : vector<2x8xf32> to vector<2x8x1xf32>
    %122 = vector.broadcast %121 : vector<2x8x1xf32> to vector<2x8x8xf32>
    %123 = arith.subf %119, %122 : vector<2x8x8xf32>
    %124 = math.exp %123 : vector<2x8x8xf32>
    %cst_57 = arith.constant dense<0.000000e+00> : vector<2x8xf32>
    %125 = vector.multi_reduction <add>, %124, %cst_57 [2] : vector<2x8x8xf32> to vector<2x8xf32>
    %126 = vector.shape_cast %125 : vector<2x8xf32> to vector<2x8x1xf32>
    %127 = vector.broadcast %126 : vector<2x8x1xf32> to vector<2x8x8xf32>
    %128 = arith.divf %124, %127 : vector<2x8x8xf32>
    "tpu.trace_start"() <{level = 10 : i32, message = "bqk,bkd->bqd"}> : () -> ()
    %cst_58 = arith.constant dense<0.000000e+00> : vector<2x8x4xf32>
    %129 = tpu.matmul %128, %114, %cst_58 {dimension_numbers = #tpu.dot_dimension_numbers<[2], [1], [1], [2], [0, 0, 0, 1, 1, 2], [0], [0]>} : vector<2x8x8xf32>, vector<2x8x4xf32>, vector<2x8x4xf32> -> vector<2x8x4xf32>
    "tpu.trace_stop"() : () -> ()
    %130 = vector.shape_cast %129 : vector<2x8x4xf32> to vector<16x4xf32>
    %131 = vector.extract_strided_slice %57 {offsets = [8, 0], sizes = [4, 128], strides = [1, 1]} : vector<128x128xf32> to vector<4x128xf32>
    %cst_59 = arith.constant dense<0.000000e+00> : vector<16x128xf32>
    %132 = tpu.matmul %130, %131, %cst_59 {dimension_numbers = #tpu.dot_dimension_numbers<[1], [0], [0], [1], [0, 0, 1, 1], [], []>} : vector<16x4xf32>, vector<4x128xf32>, vector<16x128xf32> -> vector<16x128xf32>
    %133 = arith.addf %108, %132 : vector<16x128xf32>
    %134 = vector.extract_strided_slice %41 {offsets = [0, 12], sizes = [16, 4], strides = [1, 1]} : vector<16x128xf32> to vector<16x4xf32>
    %135 = vector.shape_cast %134 : vector<16x4xf32> to vector<2x8x4xf32>
    %136 = vector.extract_strided_slice %48 {offsets = [0, 12], sizes = [16, 4], strides = [1, 1]} : vector<16x128xf32> to vector<16x4xf32>
    %137 = vector.shape_cast %136 : vector<16x4xf32> to vector<2x8x4xf32>
    %138 = vector.extract_strided_slice %55 {offsets = [0, 12], sizes = [16, 4], strides = [1, 1]} : vector<16x128xf32> to vector<16x4xf32>
    %139 = vector.shape_cast %138 : vector<16x4xf32> to vector<2x8x4xf32>
    "tpu.trace_start"() <{level = 10 : i32, message = "bqd,bkd->bqk"}> : () -> ()
    %cst_60 = arith.constant dense<0.000000e+00> : vector<2x8x8xf32>
    %140 = tpu.matmul %135, %137, %cst_60 {dimension_numbers = #tpu.dot_dimension_numbers<[2], [2], [1], [1], [0, 0, 0, 1, 1, 1], [0], [0]>} : vector<2x8x4xf32>, vector<2x8x4xf32>, vector<2x8x8xf32> -> vector<2x8x8xf32>
    "tpu.trace_stop"() : () -> ()
    %cst_61 = arith.constant 5.000000e-01 : f32
    %141 = vector.broadcast %cst_61 : f32 to vector<2x8x8xf32>
    %142 = arith.mulf %140, %141 : vector<2x8x8xf32>
    %143 = vector.broadcast %4 : vector<2x1x8xf32> to vector<2x8x8xf32>
    %144 = arith.addf %142, %143 : vector<2x8x8xf32>
    %cst_62 = arith.constant dense<0xFF800000> : vector<2x8xf32>
    %145 = vector.multi_reduction <maximumf>, %144, %cst_62 [2] : vector<2x8x8xf32> to vector<2x8xf32>
    %146 = vector.shape_cast %145 : vector<2x8xf32> to vector<2x8x1xf32>
    %147 = vector.broadcast %146 : vector<2x8x1xf32> to vector<2x8x8xf32>
    %148 = arith.subf %144, %147 : vector<2x8x8xf32>
    %149 = math.exp %148 : vector<2x8x8xf32>
    %cst_63 = arith.constant dense<0.000000e+00> : vector<2x8xf32>
    %150 = vector.multi_reduction <add>, %149, %cst_63 [2] : vector<2x8x8xf32> to vector<2x8xf32>
    %151 = vector.shape_cast %150 : vector<2x8xf32> to vector<2x8x1xf32>
    %152 = vector.broadcast %151 : vector<2x8x1xf32> to vector<2x8x8xf32>
    %153 = arith.divf %149, %152 : vector<2x8x8xf32>
    "tpu.trace_start"() <{level = 10 : i32, message = "bqk,bkd->bqd"}> : () -> ()
    %cst_64 = arith.constant dense<0.000000e+00> : vector<2x8x4xf32>
    %154 = tpu.matmul %153, %139, %cst_64 {dimension_numbers = #tpu.dot_dimension_numbers<[2], [1], [1], [2], [0, 0, 0, 1, 1, 2], [0], [0]>} : vector<2x8x8xf32>, vector<2x8x4xf32>, vector<2x8x4xf32> -> vector<2x8x4xf32>
    "tpu.trace_stop"() : () -> ()
    %155 = vector.shape_cast %154 : vector<2x8x4xf32> to vector<16x4xf32>
    %156 = vector.extract_strided_slice %57 {offsets = [12, 0], sizes = [4, 128], strides = [1, 1]} : vector<128x128xf32> to vector<4x128xf32>
    %cst_65 = arith.constant dense<0.000000e+00> : vector<16x128xf32>
    %157 = tpu.matmul %155, %156, %cst_65 {dimension_numbers = #tpu.dot_dimension_numbers<[1], [0], [0], [1], [0, 0, 1, 1], [], []>} : vector<16x4xf32>, vector<4x128xf32>, vector<16x128xf32> -> vector<16x128xf32>
    %158 = arith.addf %133, %157 : vector<16x128xf32>
    %c0_66 = arith.constant 0 : index
    %c9 = arith.constant 9 : index
    %c0_67 = arith.constant 0 : index
    %159 = vector.load %arg4[%c0_66, %c9, %c0_67] : memref<1x24x128xf32, #tpu.memory_space<vmem>>, vector<1x1x128xf32>
    %160 = vector.shape_cast %159 : vector<1x1x128xf32> to vector<1x128xf32>
    %161 = vector.broadcast %160 : vector<1x128xf32> to vector<16x128xf32>
    %162 = arith.addf %158, %161 : vector<16x128xf32>
    %163 = arith.addf %162, %19 : vector<16x128xf32>
    %c0_68 = arith.constant 0 : index
    %c10 = arith.constant 10 : index
    %c0_69 = arith.constant 0 : index
    %164 = vector.load %arg4[%c0_68, %c10, %c0_69] : memref<1x24x128xf32, #tpu.memory_space<vmem>>, vector<1x1x128xf32>
    %165 = vector.shape_cast %164 : vector<1x1x128xf32> to vector<1x128xf32>
    %166 = vector.broadcast %165 : vector<1x128xf32> to vector<16x128xf32>
    %167 = arith.mulf %166, %163 : vector<16x128xf32>
    %c0_70 = arith.constant 0 : index
    %c11 = arith.constant 11 : index
    %c0_71 = arith.constant 0 : index
    %168 = vector.load %arg4[%c0_70, %c11, %c0_71] : memref<1x24x128xf32, #tpu.memory_space<vmem>>, vector<1x1x128xf32>
    %169 = vector.shape_cast %168 : vector<1x1x128xf32> to vector<1x128xf32>
    %170 = vector.broadcast %169 : vector<1x128xf32> to vector<16x128xf32>
    %171 = arith.addf %167, %170 : vector<16x128xf32>
    %c0_72 = arith.constant 0 : index
    %c768 = arith.constant 768 : index
    %c0_73 = arith.constant 0 : index
    %172 = vector.load %arg3[%c0_72, %c768, %c0_73] : memref<1x1408x128xf32, #tpu.memory_space<vmem>>, vector<1x128x128xf32>
    %173 = vector.shape_cast %172 : vector<1x128x128xf32> to vector<128x128xf32>
    %cst_74 = arith.constant dense<0.000000e+00> : vector<16x128xf32>
    %174 = tpu.matmul %171, %173, %cst_74 {dimension_numbers = #tpu.dot_dimension_numbers<[1], [0], [0], [1], [0, 0, 1, 1], [], []>} : vector<16x128xf32>, vector<128x128xf32>, vector<16x128xf32> -> vector<16x128xf32>
    %c0_75 = arith.constant 0 : index
    %c12 = arith.constant 12 : index
    %c0_76 = arith.constant 0 : index
    %175 = vector.load %arg4[%c0_75, %c12, %c0_76] : memref<1x24x128xf32, #tpu.memory_space<vmem>>, vector<1x1x128xf32>
    %176 = vector.shape_cast %175 : vector<1x1x128xf32> to vector<1x128xf32>
    %177 = vector.broadcast %176 : vector<1x128xf32> to vector<16x128xf32>
    %178 = arith.addf %174, %177 : vector<16x128xf32>
    %cst_77 = arith.constant 0.000000e+00 : f32
    %179 = vector.broadcast %cst_77 : f32 to vector<16x128xf32>
    %180 = arith.maximumf %178, %179 : vector<16x128xf32>
    %c0_78 = arith.constant 0 : index
    %c896 = arith.constant 896 : index
    %c0_79 = arith.constant 0 : index
    %181 = vector.load %arg3[%c0_78, %c896, %c0_79] : memref<1x1408x128xf32, #tpu.memory_space<vmem>>, vector<1x128x128xf32>
    %182 = vector.shape_cast %181 : vector<1x128x128xf32> to vector<128x128xf32>
    %cst_80 = arith.constant dense<0.000000e+00> : vector<16x128xf32>
    %183 = tpu.matmul %180, %182, %cst_80 {dimension_numbers = #tpu.dot_dimension_numbers<[1], [0], [0], [1], [0, 0, 1, 1], [], []>} : vector<16x128xf32>, vector<128x128xf32>, vector<16x128xf32> -> vector<16x128xf32>
    %c0_81 = arith.constant 0 : index
    %c13 = arith.constant 13 : index
    %c0_82 = arith.constant 0 : index
    %184 = vector.load %arg4[%c0_81, %c13, %c0_82] : memref<1x24x128xf32, #tpu.memory_space<vmem>>, vector<1x1x128xf32>
    %185 = vector.shape_cast %184 : vector<1x1x128xf32> to vector<1x128xf32>
    %186 = vector.broadcast %185 : vector<1x128xf32> to vector<16x128xf32>
    %187 = arith.addf %183, %186 : vector<16x128xf32>
    %188 = arith.addf %187, %171 : vector<16x128xf32>
    %c0_83 = arith.constant 0 : index
    %c14 = arith.constant 14 : index
    %c0_84 = arith.constant 0 : index
    %189 = vector.load %arg4[%c0_83, %c14, %c0_84] : memref<1x24x128xf32, #tpu.memory_space<vmem>>, vector<1x1x128xf32>
    %190 = vector.shape_cast %189 : vector<1x1x128xf32> to vector<1x128xf32>
    %191 = vector.broadcast %190 : vector<1x128xf32> to vector<16x128xf32>
    %192 = arith.mulf %191, %188 : vector<16x128xf32>
    %c0_85 = arith.constant 0 : index
    %c15 = arith.constant 15 : index
    %c0_86 = arith.constant 0 : index
    %193 = vector.load %arg4[%c0_85, %c15, %c0_86] : memref<1x24x128xf32, #tpu.memory_space<vmem>>, vector<1x1x128xf32>
    %194 = vector.shape_cast %193 : vector<1x1x128xf32> to vector<1x128xf32>
    %195 = vector.broadcast %194 : vector<1x128xf32> to vector<16x128xf32>
    %196 = arith.addf %192, %195 : vector<16x128xf32>
    %c0_87 = arith.constant 0 : index
    %c1024 = arith.constant 1024 : index
    %c0_88 = arith.constant 0 : index
    %197 = vector.load %arg3[%c0_87, %c1024, %c0_88] : memref<1x1408x128xf32, #tpu.memory_space<vmem>>, vector<1x128x128xf32>
    %198 = vector.shape_cast %197 : vector<1x128x128xf32> to vector<128x128xf32>
    %cst_89 = arith.constant dense<0.000000e+00> : vector<16x128xf32>
    %199 = tpu.matmul %196, %198, %cst_89 {dimension_numbers = #tpu.dot_dimension_numbers<[1], [0], [0], [1], [0, 0, 1, 1], [], []>} : vector<16x128xf32>, vector<128x128xf32>, vector<16x128xf32> -> vector<16x128xf32>
    %c0_90 = arith.constant 0 : index
    %c16 = arith.constant 16 : index
    %c0_91 = arith.constant 0 : index
    %200 = vector.load %arg4[%c0_90, %c16, %c0_91] : memref<1x24x128xf32, #tpu.memory_space<vmem>>, vector<1x1x128xf32>
    %201 = vector.shape_cast %200 : vector<1x1x128xf32> to vector<1x128xf32>
    %202 = vector.broadcast %201 : vector<1x128xf32> to vector<16x128xf32>
    %203 = arith.addf %199, %202 : vector<16x128xf32>
    %cst_92 = arith.constant 0.000000e+00 : f32
    %204 = vector.broadcast %cst_92 : f32 to vector<16x128xf32>
    %205 = arith.maximumf %203, %204 : vector<16x128xf32>
    %c0_93 = arith.constant 0 : index
    %c1152 = arith.constant 1152 : index
    %c0_94 = arith.constant 0 : index
    %206 = vector.load %arg3[%c0_93, %c1152, %c0_94] : memref<1x1408x128xf32, #tpu.memory_space<vmem>>, vector<1x128x128xf32>
    %207 = vector.shape_cast %206 : vector<1x128x128xf32> to vector<128x128xf32>
    %cst_95 = arith.constant dense<0.000000e+00> : vector<16x128xf32>
    %208 = tpu.matmul %205, %207, %cst_95 {dimension_numbers = #tpu.dot_dimension_numbers<[1], [0], [0], [1], [0, 0, 1, 1], [], []>} : vector<16x128xf32>, vector<128x128xf32>, vector<16x128xf32> -> vector<16x128xf32>
    %c0_96 = arith.constant 0 : index
    %c17 = arith.constant 17 : index
    %c0_97 = arith.constant 0 : index
    %209 = vector.load %arg4[%c0_96, %c17, %c0_97] : memref<1x24x128xf32, #tpu.memory_space<vmem>>, vector<1x1x128xf32>
    %210 = vector.shape_cast %209 : vector<1x1x128xf32> to vector<1x128xf32>
    %211 = vector.broadcast %210 : vector<1x128xf32> to vector<16x128xf32>
    %212 = arith.addf %208, %211 : vector<16x128xf32>
    %213 = arith.addf %212, %196 : vector<16x128xf32>
    %c0_98 = arith.constant 0 : index
    %c18 = arith.constant 18 : index
    %c0_99 = arith.constant 0 : index
    %214 = vector.load %arg4[%c0_98, %c18, %c0_99] : memref<1x24x128xf32, #tpu.memory_space<vmem>>, vector<1x1x128xf32>
    %215 = vector.shape_cast %214 : vector<1x1x128xf32> to vector<1x128xf32>
    %216 = vector.broadcast %215 : vector<1x128xf32> to vector<16x128xf32>
    %217 = arith.mulf %216, %213 : vector<16x128xf32>
    %c0_100 = arith.constant 0 : index
    %c19 = arith.constant 19 : index
    %c0_101 = arith.constant 0 : index
    %218 = vector.load %arg4[%c0_100, %c19, %c0_101] : memref<1x24x128xf32, #tpu.memory_space<vmem>>, vector<1x1x128xf32>
    %219 = vector.shape_cast %218 : vector<1x1x128xf32> to vector<1x128xf32>
    %220 = vector.broadcast %219 : vector<1x128xf32> to vector<16x128xf32>
    %221 = arith.addf %217, %220 : vector<16x128xf32>
    %c0_102 = arith.constant 0 : index
    %c1280 = arith.constant 1280 : index
    %c0_103 = arith.constant 0 : index
    %222 = vector.load %arg3[%c0_102, %c1280, %c0_103] : memref<1x1408x128xf32, #tpu.memory_space<vmem>>, vector<1x128x128xf32>
    %223 = vector.shape_cast %222 : vector<1x128x128xf32> to vector<128x128xf32>
    %cst_104 = arith.constant dense<0.000000e+00> : vector<16x128xf32>
    %224 = tpu.matmul %221, %223, %cst_104 {dimension_numbers = #tpu.dot_dimension_numbers<[1], [0], [0], [1], [0, 0, 1, 1], [], []>} : vector<16x128xf32>, vector<128x128xf32>, vector<16x128xf32> -> vector<16x128xf32>
    %c0_105 = arith.constant 0 : index
    %c20 = arith.constant 20 : index
    %c0_106 = arith.constant 0 : index
    %225 = vector.load %arg4[%c0_105, %c20, %c0_106] : memref<1x24x128xf32, #tpu.memory_space<vmem>>, vector<1x1x128xf32>
    %226 = vector.shape_cast %225 : vector<1x1x128xf32> to vector<1x128xf32>
    %227 = vector.broadcast %226 : vector<1x128xf32> to vector<16x128xf32>
    %228 = arith.addf %224, %227 : vector<16x128xf32>
    %229 = arith.addf %228, %3 : vector<16x128xf32>
    %c0_107 = arith.constant 0 : index
    %c21 = arith.constant 21 : index
    %c0_108 = arith.constant 0 : index
    %230 = vector.load %arg4[%c0_107, %c21, %c0_108] : memref<1x24x128xf32, #tpu.memory_space<vmem>>, vector<1x1x128xf32>
    %231 = vector.shape_cast %230 : vector<1x1x128xf32> to vector<1x128xf32>
    %232 = vector.broadcast %231 : vector<1x128xf32> to vector<16x128xf32>
    %233 = arith.mulf %232, %229 : vector<16x128xf32>
    %c0_109 = arith.constant 0 : index
    %c22 = arith.constant 22 : index
    %c0_110 = arith.constant 0 : index
    %234 = vector.load %arg4[%c0_109, %c22, %c0_110] : memref<1x24x128xf32, #tpu.memory_space<vmem>>, vector<1x1x128xf32>
    %235 = vector.shape_cast %234 : vector<1x1x128xf32> to vector<1x128xf32>
    %236 = vector.broadcast %235 : vector<1x128xf32> to vector<16x128xf32>
    %237 = arith.addf %233, %236 : vector<16x128xf32>
    %c0_111 = arith.constant 0 : index
    %c0_112 = arith.constant 0 : index
    %238 = vector.load %arg6[%c0_111, %c0_112] : memref<16x128xf32, #tpu.memory_space<vmem>>, vector<16x128xf32>
    tpu.vector_store %arg6[%c0_111, %c0_112], %237 {strides = array<i32>} : memref<16x128xf32, #tpu.memory_space<vmem>>, vector<16x128xf32>,
    %c0_113 = arith.constant 0 : index
    %c0_114 = arith.constant 0 : index
    %239 = vector.load %arg5[%c0_113, %c0_114] : memref<16x128xf32, #tpu.memory_space<vmem>>, vector<16x128xf32>
    tpu.vector_store %arg5[%c0_113, %c0_114], %237 {strides = array<i32>} : memref<16x128xf32, #tpu.memory_space<vmem>>, vector<16x128xf32>,
    return
  }
  func.func @transform_0(%arg0: i32) -> (i32, i32) {
    %c0_i32 = arith.constant 0 : i32
    %c0_i32_0 = arith.constant 0 : i32
    %c0_i32_1 = arith.constant 0 : i32
    return %c0_i32, %c0_i32_0 : i32, i32
  }
  func.func @transform_1(%arg0: i32) -> (i32, i32, i32) {
    %c0_i32 = arith.constant 0 : i32
    %c0_i32_0 = arith.constant 0 : i32
    %c0_i32_1 = arith.constant 0 : i32
    %c0_i32_2 = arith.constant 0 : i32
    return %c0_i32, %c0_i32_0, %c0_i32_1 : i32, i32, i32
  }
  func.func @transform_2(%arg0: i32) -> (i32, i32, i32) {
    %c0_i32 = arith.constant 0 : i32
    %c0_i32_0 = arith.constant 0 : i32
    %c0_i32_1 = arith.constant 0 : i32
    return %arg0, %c0_i32, %c0_i32_0 : i32, i32, i32
  }
  func.func @transform_3(%arg0: i32) -> (i32, i32, i32) {
    %c0_i32 = arith.constant 0 : i32
    %c0_i32_0 = arith.constant 0 : i32
    %c0_i32_1 = arith.constant 0 : i32
    return %arg0, %c0_i32, %c0_i32_0 : i32, i32, i32
  }
  func.func @transform_4(%arg0: i32) -> (i32, i32) {
    %c0_i32 = arith.constant 0 : i32
    %c0_i32_0 = arith.constant 0 : i32
    %c0_i32_1 = arith.constant 0 : i32
    return %c0_i32, %c0_i32_0 : i32, i32
  }
}

</mosaic_0001>

<bundles_post_ra>
// kernel: tpu_custom_call.1
= control target key start
LH: loop header
LB: loop body
LE: loop exit
PB: predicated region body
PF: predicated region fallthrough
CT: control target
= control target key end

     0   :  { %s2674_s0 = inlined_call_operand.hbm [shape: f32[16,128], index: 0, kind: input, shape index: {}]   ;;  %s2675_s1 = inlined_call_operand.hbm [shape: f32[2,1,8], index: 1, kind: input, shape index: {}]   ;;  %s2676_s2 = inlined_call_operand.hbm [shape: f32[2,1408,128], index: 2, kind: input, shape index: {}]   ;;  %s2677_s3 = inlined_call_operand.hbm [shape: f32[2,24,128], index: 3, kind: input, shape index: {}]   ;;  %s2678_s4 = inlined_call_operand.hbm [shape: f32[16,128], index: 4, kind: output, shape index: {}]  }
   0x1   :  { %2682 = sst [smem:[#allocation15_spill]] %s2674_s0 }
   0x2   :  { %2683 = sst [smem:[#allocation16_spill]] %s2675_s1 }
   0x3   :  { %2684 = sst [smem:[#allocation17_spill]] %s2676_s2 }
   0x4   :  { %9 = vsyncpa [#allocation4], 0 }
   0x5   :  { %10 = vsyncpa [#allocation7], 0 }
   0x6   :  { %11 = vsyncpa [#allocation5], 0  ;;  %s2087_s15 = smov 0   ;;  %s2089_s16 = smov 0  }
   0x7   :  { %s2091_s17 = smov 0   ;;  %s2093_s18 = smov 0  }
   0x8 LB: > { %s2106_s19 = sadd.s32 4294967295, %s2048_s18   ;;  %p79_p0 = scmp.ne.s32.totalorder %s2040_s16, %s2036_s15  ;;  %s2048_s18 = sphi %s2093_s18, %s2697_s18   ;;  %s2044_s17 = sphi %s2091_s17, %s2696_s17   ;;  %s2040_s16 = sphi %s2089_s16, %s2695_s16   ;;  %s2036_s15 = sphi %s2087_s15, %s2694_s15  }
   0x9   : > { %p80_p1 = scmp.eq.s32.totalorder %s2106_s19, 0  ;;  %p1642_p2 = scmp.ge.s32.totalorder %s2048_s18, 1 }
   0xa   : > { %p137_p3 = scmp.lt.s32.totalorder %s2048_s18, 3  ;;  %p1643_p4 = scmp.ne.s32.totalorder %s2106_s19, 0 }
   0xb   : > { %p2115_p5 = por %p80_p1, %p79_p0  ;;  %s2686_s0 = sld [smem:[#allocation15_spill]] }
   0xc   : > { %p2122_p6 = pnand %p1642_p2, %p137_p3  ;;  %s2050_s25 = smov [#allocation3]  }
   0xd   : > { %s150_s26 = sshll.u32 %s2050_s25, 4  ;;  %s2135_s28 = sadd.s32 1, %s2048_s18   ;;  %s151_s26 = int_to_ptr.vmem [resolvable:$true] %s150_s26 }
   0xe   : > { %p1730_p7 = pneg %p2122_p6  ;;  %s2680_s29 = smov 128  }
   0xf   : > { %s2052_s30 = smov 8   ;;  %s63_s5 = ssub.s32 %s2048_s18, %s2135_s28 }
  0x10   : > { %p2130_p8 = pnand %p1730_p7, %p80_p1  ;;  %s66_s6 = sadd.s32 1, %s2044_s17 }
  0x11   : > { %s148_s23 = sshll.u32 %s2686_s0, 4  ;;  %p64_p9 = scmp.eq.s32.totalorder %s63_s5, 0  ;;  %s149_s23 = int_to_ptr.hbm [resolvable:$true] %s148_s23 }
  0x12   : > { %1733 = dma.hbm_to_vmem [thread:$0]  (!%p2130_p8), %s149_s23, 256, %s151_s26, [#allocation4], %s2680_s29, %s2680_s29, %s2052_s30  }
  0x13   : > { %p73_p10 = scmp.ne.s32.totalorder %s2044_s17, %s2040_s16  ;;  %p74_p11 = scmp.eq.s32.totalorder %s2048_s18, 0 }
  0x14   : > { %p1746_p12 = scmp.lt.s32.totalorder %s2048_s18, 2  ;;  %s178_s8 = sand.u32 1, %s2048_s18  }
  0x15   : > { %s2150_s7 = scalar_select %p64_p9, %s2044_s17, %s66_s6  }
  0x16   : > { %p75_p13 = por %p74_p11, %p73_p10  ;;  %s2679_s9 = sand.u32 1, %s2044_s17  }
  0x17   : > { %s1708_s10 = smul.u32 1408, %s2679_s9  ;;  %s2690_s1 = sld [smem:[#allocation16_spill]] }
  0x18   : > { %p2156_p0 = pnand %p1746_p12, %p75_p13  ;;  %s1709_s12 = smul.u32 1408, %s2048_s18 }
  0x19   : > { %s2691_s2 = sld [smem:[#allocation17_spill]]  ;;  %s182_s25 = scalar_lea.vmem [#allocation8], %s1708_s10 }
  0x1a   : > { %s190_s26 = sshll.u32 %s182_s25, 4  ;;  %s2167_s6 = scalar_lea.sflag [#allocation4], %s178_s8  ;;  %s191_s26 = int_to_ptr.vmem [resolvable:$true] %s190_s26 }
  0x1b   : > { %p1888_p3 = pneg %p2156_p0 }
  0x1d   : > { %s162_s15 = sshll.u32 %s2690_s1, 4  ;;  %s163_s15 = int_to_ptr.hbm [resolvable:$true] %s162_s15 }
  0x1f   : > { %s187_s23 = scalar_lea.hbm %s2691_s2, %s1709_s12  ;;  %s1891_s10 = scalar_lea.hbm %s2691_s2, 2816 }
  0x20   : > { %s188_s5 = sshll.u32 %s187_s23, 4  ;;  %s189_s5 = int_to_ptr.hbm [resolvable:$true] %s188_s5 }
  0x21   : > { %s1884_s9 = sshra.s32 %s189_s5, 4  ;;  %s1885_s9 = int_to_ptr.hbm [resolvable:$true] %s1884_s9 }
  0x22   : > { %s1886_s29 = scalar_lea.hbm %s1885_s9, 1408  ;;  %p1892_p10 = scmp.lt.s32.totalorder %s1885_s9, %s2691_s2 }
  0x23   : > { %p1887_p2 = scmp.ne.s32.totalorder %s1885_s9, %s1886_s29  ;;  %p1893_p11 = scmp.lt.s32.totalorder %s1891_s10, %s1886_s29 }
  0x25   : > { %p1889_p7 = pnand %p1888_p3, %p1887_p2  ;;  %p1894_p12 = por %p1893_p11, %p1892_p10 }
  0x27   : > { %p1890_p9 = pneg %p1889_p7 }
  0x29   : > { %p1895_p13 = pnand %p1894_p12, %p1890_p9 }
  0x2b   : > { %1898 = shalt.err (!%p1895_p13)
}
  0x2c   : > { %s2692_s8 = smov 128   ;;  %s2053_s22 = smov [#allocation6]  }
  0x2d   : > { %1740 = dma.hbm_to_vmem [thread:$0]  (!%p2156_p0), %s189_s5, 22528, %s191_s26, %s2167_s6, %s2692_s8, %s2692_s8, %s2052_s30  }
  0x2e   : > { %s164_s23 = sshll.u32 %s2053_s22, 4  ;;  %s2693_s25 = sand.u32 1, %s2044_s17   ;;  %s165_s23 = int_to_ptr.vmem [resolvable:$true] %s164_s23 }
  0x2f   : > { %s1710_s9 = smul.u32 24, %s2693_s25  ;;  %s2054_s29 = smov 16  }
  0x30   : > { %s2055_s13 = smov 1   ;;  %s1711_s12 = smul.u32 24, %s2048_s18 }
  0x31   : > { %1736 = dma.hbm_to_vmem [thread:$0]  (!%p2130_p8), %s163_s15, 32, %s165_s23, [#allocation7], %s2054_s29, %s2054_s29, %s2055_s13  }
  0x32   : > { %s204_s10 = scalar_lea.vmem [#allocation9], %s1710_s9  ;;  %s209_s1 = scalar_lea.hbm %s2677_s3, %s1711_s12 }
  0x33   : > { %s212_s14 = sshll.u32 %s204_s10, 4  ;;  %s210_s2 = sshll.u32 %s209_s1, 4  ;;  %s213_s14 = int_to_ptr.vmem [resolvable:$true] %s212_s14  ;;  %s211_s2 = int_to_ptr.hbm [resolvable:$true] %s210_s2 }
  0x34   : > { %s1944_s26 = sshra.s32 %s211_s2, 4  ;;  %s1951_s18 = scalar_lea.hbm %s2677_s3, 48  ;;  %s1945_s26 = int_to_ptr.hbm [resolvable:$true] %s1944_s26 }
  0x35   : > { %s1946_s5 = scalar_lea.hbm %s1945_s26, 24  ;;  %p1952_p8 = scmp.lt.s32.totalorder %s1945_s26, %s2677_s3 }
  0x36   : > { %p1947_p2 = scmp.ne.s32.totalorder %s1945_s26, %s1946_s5  ;;  %p1953_p10 = scmp.lt.s32.totalorder %s1951_s18, %s1946_s5 }
  0x38   : > { %p1949_p7 = pnand %p1947_p2, %p1888_p3  ;;  %p1954_p11 = por %p1953_p10, %p1952_p8 }
  0x3a   : > { %p1950_p9 = pneg %p1949_p7 }
  0x3c   : > { %p1955_p12 = pnand %p1954_p11, %p1950_p9 }
  0x3e   : > { %1958 = shalt.err (!%p1955_p12)
}
  0x3f   : > { %1743 = dma.hbm_to_vmem [thread:$0]  (!%p2156_p0), %s211_s2, 384, %s213_s14, %s2167_s6, %s2692_s8, %s2692_s8, %s2052_s30  }
  0x40   : > { %224 = sbr.rel (%p2122_p6) target bundleno = 2686 (0xa7e), region = 36 }
  0x45   : > { %2019 = dma.done.wait (%p80_p1), [#allocation4], 256  }
  0x46   : > { %2021 = vsyncadd (%p80_p1), [#allocation4], 4294967040 }
  0x47   : > { %2023 = dma.done.wait (%p80_p1), [#allocation7], 32  }
  0x48   : > { %2025 = vsyncadd (%p80_p1), [#allocation7], 4294967264  ;;  %s236_s0 = sand.u32 1, %s2106_s19   ;;  %s238_s1 = sand.u32 1, %s2040_s16  }
  0x49   : > { %s1712_s2 = smul.u32 1408, %s238_s1  ;;  %s237_s24 = scalar_lea.sflag [#allocation4], %s236_s0 }
  0x4b   : > { %s2221_s30 = scalar_lea.vmem [#allocation8], %s1712_s2 }
  0x4c   : > { %2027 = dma.done.wait (%p2115_p5), %s237_s24, 22912  }
  0x4d   : > { %2029 = vsyncadd (%p2115_p5), %s237_s24, 4294944384  ;;  %s1713_s11 = smul.u32 24, %s238_s1 }
  0x4e   : > { %279 = sbr.rel (%p1643_p4) target bundleno = 86 (0x56), region = 56 }
  0x4f   : > { %s2227_s6 = scalar_lea.vmem [#allocation9], %s1713_s11 }
  0x53   : > { %v280_v0 = vld [vmem:[#allocation3] sm:$0xff]  ;;  %v281_v1 = vld [vmem:[#allocation3 + $0x8] sm:$0xff] }
  0x54   : > { %282 = vst [vmem:[#allocation2] sm:$0xff] %v280_v0 }
  0x55   : > { %283 = vst [vmem:[#allocation2 + $0x8] sm:$0xff] %v281_v1 }
  0x56 PF: > { %v352_v2 = vld [vmem:[%s2221_s30 + $0xf8] sm:$0xff]  ;;  %v351_v3 = vld [vmem:[%s2221_s30 + $0xf0] sm:$0xff]  ;;  %v350_v4 = vld [vmem:[%s2221_s30 + $0xe8] sm:$0xff]  ;;  %vm511_vm0 = vcmask 31744   ;;  %s2056_s20 = smov 124   ;;  %s2057_s8 = smov 120  }
  0x57   : > { %355 = vmatpush.msra.mxu1 %v352_v2  ;;  %v349_v5 = vld [vmem:[%s2221_s30 + $0xe0] sm:$0xff]  ;;  %v348_v6 = vld [vmem:[%s2221_s30 + $0xd8] sm:$0xff]  ;;  %v347_v7 = vld [vmem:[%s2221_s30 + $0xd0] sm:$0xff]  ;;  %vm574_vm1 = vcmask 64512   ;;  %s2058_s25 = smov 116   ;;  %vm839_vm14 = vcmask 1043456  }
  0x58   : > { %v401_v8 = vld [vmem:[%s2221_s30 + $0x178] sm:$0xff]  ;;  %v400_v10 = vld [vmem:[%s2221_s30 + $0x170] sm:$0xff]  ;;  %v346_v12 = vld [vmem:[%s2221_s30 + $0xc8] sm:$0xff]  ;;  %s2059_s9 = smov [#allocation10]   ;;  %s1548_s10 = sshll.u32 %s2678_s4, 4  ;;  %s1549_s10 = int_to_ptr.hbm [resolvable:$true] %s1548_s10 }
  0x59   : > { %356 = vmatpush.msra.mxu1 %v351_v3  ;;  %v442_v9 = vld [vmem:[%s2221_s30 + $0x1f8] sm:$0xff]  ;;  %404 = vmatpush.msra.mxu2 %v401_v8  ;;  %v441_v11 = vld [vmem:[%s2221_s30 + $0x1f0] sm:$0xff]  ;;  %v399_v13 = vld [vmem:[%s2221_s30 + $0x168] sm:$0xff]  ;;  %s1546_s29 = sshll.u32 %s2059_s9, 4  ;;  %p1749_p1 = scmp.eq.s32.totalorder %s2106_s19, 1  ;;  %s1547_s29 = int_to_ptr.vmem [resolvable:$true] %s1546_s29 }
  0x5a   : > { %445 = vmatpush.msra.mxu3 %v442_v9  ;;  %v440_v14 = vld [vmem:[%s2221_s30 + $0x1e8] sm:$0xff]  ;;  %v345_v15 = vld [vmem:[%s2221_s30 + $0xc0] sm:$0xff]  ;;  %v344_v18 = vld [vmem:[%s2221_s30 + $0xb8] sm:$0xff]  ;;  %s2060_s14 = smov 128   ;;  %s2061_s21 = smov 8  }
  0x5b   : > { %357 = vmatpush.msra.mxu1 %v350_v4  ;;  %405 = vmatpush.msra.mxu2 %v400_v10  ;;  %v398_v16 = vld [vmem:[%s2221_s30 + $0x160] sm:$0xff]  ;;  %v343_v19 = vld [vmem:[%s2221_s30 + $0xb0] sm:$0xff]  ;;  %v397_v20 = vld [vmem:[%s2221_s30 + $0x158] sm:$0xff] }
  0x5c   : > { %446 = vmatpush.msra.mxu3 %v441_v11  ;;  %v439_v17 = vld [vmem:[%s2221_s30 + $0x1e0] sm:$0xff]  ;;  %v438_v21 = vld [vmem:[%s2221_s30 + $0x1d8] sm:$0xff]  ;;  %v396_v22 = vld [vmem:[%s2221_s30 + $0x150] sm:$0xff] }
  0x5d   : > { %358 = vmatpush.msra.mxu1 %v349_v5  ;;  %406 = vmatpush.msra.mxu2 %v399_v13  ;;  %v437_v23 = vld [vmem:[%s2221_s30 + $0x1d0] sm:$0xff]  ;;  %v342_v24 = vld [vmem:[%s2221_s30 + $0xa8] sm:$0xff]  ;;  %v341_v27 = vld [vmem:[%s2221_s30 + $0xa0] sm:$0xff] }
  0x5e   : > { %447 = vmatpush.msra.mxu3 %v440_v14  ;;  %v395_v25 = vld [vmem:[%s2221_s30 + $0x148] sm:$0xff]  ;;  %v394_v28 = vld [vmem:[%s2221_s30 + $0x140] sm:$0xff]  ;;  %v340_v30 = vld [vmem:[%s2221_s30 + $0x98] sm:$0xff] }
  0x5f   : > { %359 = vmatpush.msra.mxu1 %v348_v6  ;;  %407 = vmatpush.msra.mxu2 %v398_v16  ;;  %v436_v26 = vld [vmem:[%s2221_s30 + $0x1c8] sm:$0xff]  ;;  %v435_v29 = vld [vmem:[%s2221_s30 + $0x1c0] sm:$0xff]  ;;  %v393_v31 = vld [vmem:[%s2221_s30 + $0x138] sm:$0xff] }
  0x60   : > { %448 = vmatpush.msra.mxu3 %v439_v17  ;;  %v434_v32 = vld [vmem:[%s2221_s30 + $0x1b8] sm:$0xff]  ;;  %v339_v33 = vld [vmem:[%s2221_s30 + $0x90] sm:$0xff]  ;;  %v338_v36 = vld [vmem:[%s2221_s30 + $0x88] sm:$0xff] }
  0x61   : > { %360 = vmatpush.msra.mxu1 %v347_v7  ;;  %408 = vmatpush.msra.mxu2 %v397_v20  ;;  %v392_v34 = vld [vmem:[%s2221_s30 + $0x130] sm:$0xff]  ;;  %v391_v37 = vld [vmem:[%s2221_s30 + $0x128] sm:$0xff]  ;;  %v337_v39 = vld [vmem:[%s2221_s30 + $0x80] sm:$0xff] }
  0x62   : > { %449 = vmatpush.msra.mxu3 %v438_v21  ;;  %v433_v35 = vld [vmem:[%s2221_s30 + $0x1b0] sm:$0xff]  ;;  %v432_v38 = vld [vmem:[%s2221_s30 + $0x1a8] sm:$0xff]  ;;  %v390_v40 = vld [vmem:[%s2221_s30 + $0x120] sm:$0xff] }
  0x63   : > { %361 = vmatpush.msra.mxu1 %v346_v12  ;;  %409 = vmatpush.msra.mxu2 %v396_v22  ;;  %v2270_v41 = vld [vmem:[#allocation2] sm:$0xff]  ;;  %v2274_v43 = vld [vmem:[#allocation2 + $0x8] sm:$0xff]  ;;  %v388_v46 = vld [vmem:[%s2221_s30 + $0x110] sm:$0xff] }
  0x64   : > { %450 = vmatpush.msra.mxu3 %v437_v23  ;;  %v431_v42 = vld [vmem:[%s2221_s30 + $0x1a0] sm:$0xff]  ;;  %v389_v44 = vld [vmem:[%s2221_s30 + $0x118] sm:$0xff]  ;;  %v429_v47 = vld [vmem:[%s2221_s30 + $0x190] sm:$0xff] }
  0x65   : > { %362 = vmatpush.msra.mxu1 %v345_v15  ;;  %410 = vmatpush.msra.mxu2 %v395_v25  ;;  %v430_v45 = vld [vmem:[%s2221_s30 + $0x198] sm:$0xff]  ;;  %v387_v48 = vld [vmem:[%s2221_s30 + $0x108] sm:$0xff]  ;;  %v386_v50 = vld [vmem:[%s2221_s30 + $0x100] sm:$0xff] }
  0x66   : > { %451 = vmatpush.msra.mxu3 %v436_v26  ;;  %v428_v49 = vld [vmem:[%s2221_s30 + $0x188] sm:$0xff]  ;;  %v427_v51 = vld [vmem:[%s2221_s30 + $0x180] sm:$0xff]  ;;  %v2286_v52 = vld [vmem:[%s2221_s30 + $0x278] sm:$0xff] }
  0x67   : > { %363 = vmatpush.msra.mxu1 %v344_v18  ;;  %411 = vmatpush.msra.mxu2 %v394_v28  ;;  %v2290_v53 = vld [vmem:[%s2221_s30 + $0x270] sm:$0xff]  ;;  %v2294_v54 = vld [vmem:[%s2221_s30 + $0x268] sm:$0xff]  ;;  %v2297_v55 = vld [vmem:[%s2221_s30 + $0x260] sm:$0xff] }
  0x68   : > { %452 = vmatpush.msra.mxu3 %v435_v29  ;;  %v2302_v56 = vld [vmem:[%s2221_s30 + $0x258] sm:$0xff]  ;;  %v2305_v57 = vld [vmem:[%s2221_s30 + $0x250] sm:$0xff]  ;;  %v2309_v58 = vld [vmem:[%s2221_s30 + $0x248] sm:$0xff] }
  0x69   : > { %364 = vmatpush.msra.mxu1 %v343_v19  ;;  %412 = vmatpush.msra.mxu2 %v393_v31  ;;  %v2313_v59 = vld [vmem:[%s2221_s30 + $0x240] sm:$0xff]  ;;  %v2317_v60 = vld [vmem:[%s2221_s30 + $0x238] sm:$0xff]  ;;  %v2321_v61 = vld [vmem:[%s2221_s30 + $0x230] sm:$0xff] }
  0x6a   : > { %453 = vmatpush.msra.mxu3 %v434_v32  ;;  %v2325_v62 = vld [vmem:[%s2221_s30 + $0x228] sm:$0xff]  ;;  %v2329_v63 = vld [vmem:[%s2221_s30 + $0x220] sm:$0xff]  ;;  %v2334_v1 = vld [vmem:[%s2221_s30 + $0x218] sm:$0xff] }
  0x6b   : > { %365 = vmatpush.msra.mxu1 %v342_v24  ;;  %413 = vmatpush.msra.mxu2 %v392_v34  ;;  %v1795_v0 = vld [vmem:[%s2227_s6 + $0x3] ss:$0 sm:$0xff]  ;;  %v1796_v2 = vld [vmem:[%s2227_s6 + $0x4] ss:$0 sm:$0xff]  ;;  %v2339_v3 = vld [vmem:[%s2221_s30 + $0x210] sm:$0xff] }
  0x6c   : > { %454 = vmatpush.msra.mxu3 %v433_v35  ;;  %v1797_v6 = vld [vmem:[%s2227_s6 + $0x5] ss:$0 sm:$0xff]  ;;  %v2344_v7 = vld [vmem:[%s2221_s30 + $0x208] sm:$0xff]  ;;  %v1799_v15 = vld [vmem:[%s2227_s6 + $0x7] ss:$0 sm:$0xff] }
  0x6d   : > { %366 = vmatpush.msra.mxu1 %v341_v27  ;;  %414 = vmatpush.msra.mxu2 %v391_v37  ;;  %v2348_v9 = vld [vmem:[%s2221_s30 + $0x200] sm:$0xff]  ;;  %v303_v29 = vld [vmem:[%s2221_s30 + $0x78] sm:$0xff]  ;;  %v301_v31 = vld [vmem:[%s2221_s30 + $0x68] sm:$0xff] }
  0x6e   : > { %455 = vmatpush.msra.mxu3 %v432_v38  ;;  %v1798_v16 = vld [vmem:[%s2227_s6 + $0x6] ss:$0 sm:$0xff]  ;;  %v2372_v25 = vld [vmem:[%s2227_s6 + $0x8] ss:$0 sm:$0xff]  ;;  %306 = vmatpush.msra.mxu0 %v303_v29  ;;  %v298_v38 = vld [vmem:[%s2221_s30 + $0x50] sm:$0xff] }
  0x6f   : > { %367 = vmatpush.msra.mxu1 %v340_v30  ;;  %415 = vmatpush.msra.mxu2 %v390_v40  ;;  %v302_v30 = vld [vmem:[%s2221_s30 + $0x70] sm:$0xff]  ;;  %v300_v32 = vld [vmem:[%s2221_s30 + $0x60] sm:$0xff]  ;;  %v299_v35 = vld [vmem:[%s2221_s30 + $0x58] sm:$0xff] }
  0x70   : > { %456 = vmatpush.msra.mxu3 %v431_v42  ;;  %307 = vmatpush.msra.mxu0 %v302_v30  ;;  %v297_v40 = vld [vmem:[%s2221_s30 + $0x48] sm:$0xff] }
  0x71   : > { %368 = vmatpush.msra.mxu1 %v339_v33  ;;  %416 = vmatpush.msra.mxu2 %v389_v44  ;;  %v2393_v33 = vld [vmem:[#allocation6] ss:$0 sm:$0xff]  ;;  %v296_v44 = vld [vmem:[%s2221_s30 + $0x40] sm:$0xff] }
  0x72   : > { %457 = vmatpush.msra.mxu3 %v430_v45  ;;  %308 = vmatpush.msra.mxu0 %v301_v31  ;;  %v295_v45 = vld [vmem:[%s2221_s30 + $0x38] sm:$0xff] }
  0x73   : > { %369 = vmatpush.msra.mxu1 %v338_v36  ;;  %417 = vmatpush.msra.mxu2 %v388_v46  ;;  %v294_v46 = vld [vmem:[%s2221_s30 + $0x30] sm:$0xff] }
  0x74   : > { %458 = vmatpush.msra.mxu3 %v429_v47  ;;  %309 = vmatpush.msra.mxu0 %v300_v32  ;;  %v293_v47 = vld [vmem:[%s2221_s30 + $0x28] sm:$0xff] }
  0x75   : > { %370 = vmatpush.msra.mxu1 %v337_v39  ;;  %418 = vmatpush.msra.mxu2 %v387_v48  ;;  %v292_v48 = vld [vmem:[%s2221_s30 + $0x20] sm:$0xff] }
  0x76   : > { %371 = vmatmul.f32.vlgmr.msra.gmra.mxu1 %v2270_v41  ;;  %459 = vmatpush.msra.mxu3 %v428_v49  ;;  %v291_v49 = vld [vmem:[%s2221_s30 + $0x18] sm:$0xff] }
  0x77   : > { %419 = vmatpush.msra.mxu2 %v386_v50  ;;  %310 = vmatpush.msra.mxu0 %v299_v35  ;;  %v290_v50 = vld [vmem:[%s2221_s30 + $0x10] sm:$0xff] }
  0x78   : > { %460 = vmatpush.msra.mxu3 %v427_v51  ;;  %v289_v51 = vld [vmem:[%s2221_s30 + $0x8] sm:$0xff] }
  0x79   : > { %311 = vmatpush.msra.mxu0 %v298_v38 }
  0x7a   : > { %1692 = vmatpush.msrb.mxu3 %v2286_v52 }
  0x7b   : > { %312 = vmatpush.msra.mxu0 %v297_v40 }
  0x7c   : > { %1693 = vmatpush.msrb.mxu3 %v2290_v53 }
  0x7d   : > { %313 = vmatpush.msra.mxu0 %v296_v44 }
  0x7e   : > { %374 = vmatmul.f32.gmra.mxu1 %v2274_v43  ;;  %1694 = vmatpush.msrb.mxu3 %v2294_v54 }
  0x7f   : > { %314 = vmatpush.msra.mxu0 %v295_v45 }
  0x80   : > { %1695 = vmatpush.msrb.mxu3 %v2297_v55 }
  0x81   : > { %315 = vmatpush.msra.mxu0 %v294_v46 }
  0x82   : > { %1696 = vmatpush.msrb.mxu3 %v2302_v56 }
  0x83   : > { %316 = vmatpush.msra.mxu0 %v293_v47 }
  0x84   : > { %1697 = vmatpush.msrb.mxu3 %v2305_v57 }
  0x85   : > { %317 = vmatpush.msra.mxu0 %v292_v48 }
  0x86   : > { %1698 = vmatpush.msrb.mxu3 %v2309_v58 }
  0x87   : > { %318 = vmatpush.msra.mxu0 %v291_v49 }
  0x88   : > { %1699 = vmatpush.msrb.mxu3 %v2313_v59 }
  0x89   : > { %319 = vmatpush.msra.mxu0 %v290_v50 }
  0x8a   : > { %1700 = vmatpush.msrb.mxu3 %v2317_v60 }
  0x8b   : > { %320 = vmatpush.msra.mxu0 %v289_v51 }
  0x8c   : > { %1701 = vmatpush.msrb.mxu3 %v2321_v61 }
  0x8e   : > { %1702 = vmatpush.msrb.mxu3 %v2325_v62 }
  0x90   : > { %1703 = vmatpush.msrb.mxu3 %v2329_v63 }
  0x92   : > { %1704 = vmatpush.msrb.mxu3 %v2334_v1 }
  0x94   : > { %1705 = vmatpush.msrb.mxu3 %v2339_v3 }
  0x96   : > { %1706 = vmatpush.msrb.mxu3 %v2344_v7 }
  0x98   : > { %1707 = vmatpush.msrb.mxu3 %v2348_v9 }
  0xf3   : > { %v372_v4 = vpop.f32.mrf.mxu1 }
  0xf4   : > { %v373_v5 = vadd.f32 %v1795_v0, %v372_v4 }
  0xf6   : > { %v380_v8 = vmul.f32 %v1796_v2, %v373_v5 }
  0xf8   : > { %v384_v10 = vadd.f32 %v1797_v6, %v380_v8 }
  0xfa   : > { %420 = vmatmul.f32.vlgmr.msra.gmra.mxu2 %v384_v10  ;;  %461 = vmatmul.f32.vlgmr.msra.gmra.mxu3 %v384_v10 }
  0xfb   : > { %v375_v11 = vpop.f32.mrf.mxu1 }
  0xfc   : > { %v376_v12 = vadd.f32 %v1795_v0, %v375_v11  ;;  %v288_v0 = vld [vmem:[%s2221_s30] sm:$0xff] }
  0xfd   : > { %321 = vmatpush.msra.mxu0 %v288_v0 }
  0xfe   : > { %v381_v13 = vmul.f32 %v1796_v2, %v376_v12  ;;  %322 = vmatmul.f32.vlgmr.msra.gmra.mxu0 %v2270_v41  ;;  %v2446_v2 = vld [vmem:[%s2227_s6 + $0x2] ss:$0 sm:$0xff] }
  0xff   : > { %486 = vmatpush.msrb.mxu0 %v2286_v52 }
 0x100   : > { %v385_v14 = vadd.f32 %v1797_v6, %v381_v13 }
 0x101   : > { %487 = vmatpush.msrb.mxu0 %v2290_v53 }
 0x102   : > { %464 = vmatmul.f32.gmra.mxu3 %v385_v14  ;;  %423 = vmatmul.f32.gmra.mxu2 %v385_v14 }
 0x103   : > { %488 = vmatpush.msrb.mxu0 %v2294_v54 }
 0x105   : > { %489 = vmatpush.msrb.mxu0 %v2297_v55 }
 0x106   : > { %325 = vmatmul.f32.gmra.mxu0 %v2274_v43 }
 0x107   : > { %490 = vmatpush.msrb.mxu0 %v2302_v56 }
 0x109   : > { %491 = vmatpush.msrb.mxu0 %v2305_v57 }
 0x10a   : > { %505 = vmatmul.f32.vlgmr.msrb.gmra.mxu3 %v2274_v43 }
 0x10b   : > { %492 = vmatpush.msrb.mxu0 %v2309_v58  ;;  %v2430_v58 = vld [vmem:[#allocation6 + $0x1] ss:$0 sm:$0xff] }
 0x10d   : > { %493 = vmatpush.msrb.mxu0 %v2313_v59 }
 0x10f   : > { %494 = vmatpush.msrb.mxu0 %v2317_v60 }
 0x111   : > { %495 = vmatpush.msrb.mxu0 %v2321_v61  ;;  %v2439_v61 = vld [vmem:[%s2227_s6] ss:$0 sm:$0xff] }
 0x113   : > { %496 = vmatpush.msrb.mxu0 %v2325_v62 }
 0x115   : > { %497 = vmatpush.msrb.mxu0 %v2329_v63  ;;  %v2442_v63 = vld [vmem:[%s2227_s6 + $0x1] ss:$0 sm:$0xff] }
 0x117   : > { %498 = vmatpush.msrb.mxu0 %v2334_v1 }
 0x119   : > { %499 = vmatpush.msrb.mxu0 %v2339_v3 }
 0x11b   : > { %500 = vmatpush.msrb.mxu0 %v2344_v7 }
 0x11d   : > { %501 = vmatpush.msrb.mxu0 %v2348_v9 }
 0x11e   : > { %502 = vmatmul.f32.vlgmr.msrb.gmra.mxu0 %v2270_v41 }
 0x17b   : > { %v2436_v41 = vpop.f32.mrf.mxu0 }
 0x17d   : > { %v421_v17 = vpop.f32.mrf.mxu2  ;;  %v462_v18 = vpop.f32.mrf.mxu3 }
 0x17e   : > { %v2355_v19 = vadd.f32 %v1799_v15, %v462_v18  ;;  %v2359_v20 = vadd.f32 %v1798_v16, %v421_v17 }
 0x180   : > { %1652 = vmatpush.xpose.msk.msrb.mxu1 %vm511_vm0, %v2355_v19 }
 0x183   : > { %1653 = vmatmul.msk.f32.vlgmr.msrb.gmra.mxu1 %vm511_vm0, %v2359_v20  ;;  %v326_v62 = vpop.f32.mrf.mxu0 }
 0x184   : > { %v327_v1 = vadd.f32 %v2439_v61, %v326_v62 }
 0x185   : > { %v465_v21 = vpop.f32.mrf.mxu3  ;;  %v424_v22 = vpop.f32.mrf.mxu2 }
 0x186   : > { %v2363_v23 = vadd.f32 %v1799_v15, %v465_v21  ;;  %v2365_v24 = vadd.f32 %v1798_v16, %v424_v22  ;;  %v332_v3 = vmul.f32 %v2442_v63, %v327_v1 }
 0x188   : > { %699 = vrot.lane.b32.xlu0 %v2363_v23, %s2056_s20  ;;  %1654 = vmatpush.xpose.msk.msrb.mxu2 %vm511_vm0, %v2363_v23  ;;  %v2450_v4 = vadd.f32 %v2446_v2, %v332_v3 }
 0x18b   : > { %1655 = vmatmul.msk.f32.vlgmr.msrb.gmra.mxu2 %vm511_vm0, %v2365_v24 }
 0x18d   : > { %v506_v26 = vpop.f32.mrf.mxu3 }
 0x18e   : > { %v2377_v27 = vadd.f32 %v2372_v25, %v506_v26 }
 0x190   : > { %697 = vrot.lane.b32.xlu0 %v2365_v24, %s2056_s20  ;;  %664 = vmatpush.msra.mxu1 %v2377_v27 }
 0x198   : > { %669 = vrot.lane.b32.xlu0 %v2359_v20, %s2056_s20 }
 0x19b   : > { %v503_v9 = vpop.f32.mrf.mxu0 }
 0x19c   : > { %v2455_v10 = vadd.f32 %v2372_v25, %v503_v9 }
 0x19e   : > { %641 = vmatpush.msra.mxu2 %v2455_v10 }
 0x1a0   : > { %805 = vrot.lane.b32.xlu0 %v2377_v27, %s2056_s20 }
 0x1a8   : > { %896 = vrot.lane.b32.xlu0 %v2359_v20, %s2057_s8 }
 0x1fa   : > { %v700_v28 = vpop.permute.xlu0 %699 }
 0x1fb   : > { %1660 = vmatpush.xpose.msk.msra.mxu3 %vm511_vm0, %v700_v28 }
 0x200   : > { %v535_v34 = vpop.f32.mrf.mxu1 }
 0x201   : > { %v564_v36 = vmul.f32 0.5, %v535_v34 }
 0x202   : > { %v698_v37 = vpop.permute.xlu0 %697 }
 0x203   : > { %1661 = vmatmul.msk.f32.vlgmr.msra.gmra.mxu3 %vm511_vm0, %v698_v37  ;;  %v572_v39 = vadd.f32 %v2393_v33, %v564_v36 }
 0x205   : > { %v575_v42 = vsel %vm574_vm1, %v572_v39, -inf }
 0x206   : > { %576 = vmax.xlane.f32.xlu1 %v575_v42 }
 0x20a   : > { %v670_v18 = vpop.permute.xlu0 %669 }
 0x20e   : > { %v561_v5 = vpop.f32.mrf.mxu2 }
 0x20f   : > { %v565_v6 = vmul.f32 0.5, %v561_v5 }
 0x211   : > { %v573_v7 = vadd.f32 %v2430_v58, %v565_v6 }
 0x212   : > { %v806_v36 = vpop.permute.xlu0 %805 }
 0x213   : > { %v578_v8 = vsel %vm574_vm1, %v573_v7, -inf }
 0x279   : > { %v577_v43 = vpop.xlane.xlu1 %576 }
 0x27a   : > { %v581_v52 = vsub.f32 %v572_v39, %v577_v43 }
 0x27c   : > { %v583_v53 = vmul.f32 1.442695, %v581_v52 }
 0x27e   : > { %1820 = vpow2.f32 %v583_v53 }
 0x284   : > { %v1821_v54 = vpop.eup %1820 }
 0x285   : > { %v587_v55 = vsel %vm574_vm1, %v1821_v54, 0.0 }
 0x286   : > { %v722_v56 = vpop.f32.mrf.mxu3  ;;  %588 = vadd.xlane.f32.xlu2 %v587_v55 }
 0x287   : > { %v726_v57 = vmul.f32 0.5, %v722_v56 }
 0x289   : > { %v728_v59 = vadd.f32 %v2430_v58, %v726_v57  ;;  %v897_v57 = vpop.permute.xlu0 %896 }
 0x28b   : > { %v732_v60 = vsel %vm574_vm1, %v728_v59, -inf }
 0x28c   : > { %733 = vmax.xlane.f32.xlu1 %v732_v60 }
 0x29e   : > { %671 = vrot.lane.b32.xlu2 %v2355_v19, %s2056_s20 }
 0x2c7   : > { %579 = vmax.xlane.f32.xlu2 %v578_v8 }
 0x2f9   : > { %v589_v11 = vpop.xlane.xlu2 %588 }
 0x2fa   : > { %1822 = vrcp.f32 %v589_v11  ;;  %v604_v22 = vand.u32 2147483648, %v589_v11  ;;  %v602_v25 = vand.u32 2147483647, %v589_v11  ;;  %vm598_vm3 = vweird.f32 %v589_v11 }
 0x2fc   : > { %v605_v29 = vor.u32 1.1754944e-38, %v604_v22  ;;  %vm603_vm5 = vcmp.eq.f32.partialorder %v602_v25, 8.507059e+37 }
 0x2ff   : > { %v734_v12 = vpop.xlane.xlu1 %733 }
 0x300   : > { %v1823_v13 = vpop.eup %1822  ;;  %v736_v14 = vsub.f32 %v728_v59, %v734_v12 }
 0x301   : > { %v594_v15 = vmul.f32 %v1823_v13, %v589_v11  ;;  %v672_v16 = vpop.permute.xlu2 %671  ;;  %vm599_vm2 = vweird.f32 %v1823_v13 }
 0x302   : > { %v739_v17 = vmul.f32 1.442695, %v736_v14  ;;  %1658 = vmatpush.xpose.msk.msrb.mxu2 %vm511_vm0, %v672_v16  ;;  %vm600_vm4 = vmor %vm598_vm3, %vm599_vm2 }
 0x303   : > { %v595_v21 = vsub.f32 1.0, %v594_v15 }
 0x304   : > { %1824 = vpow2.f32 %v739_v17 }
 0x305   : > { %v596_v26 = vmul.f32 %v1823_v13, %v595_v21 }
 0x307   : > { %v597_v28 = vadd.f32 %v1823_v13, %v596_v26 }
 0x309   : > { %v601_v30 = vsel %vm600_vm4, %v1823_v13, %v597_v28 }
 0x30a   : > { %v1825_v31 = vpop.eup %1824  ;;  %v606_v32 = vsel %vm603_vm5, %v605_v29, %v601_v30 }
 0x30b   : > { %v744_v34 = vsel %vm574_vm1, %v1825_v31, 0.0  ;;  %v607_v35 = vmul.f32 %v1821_v54, %v606_v32  ;;  %v509_v32 = vld [vmem:[%s2221_s30 + $0x280] sm:$0xff] }
 0x30c   : > { %745 = vadd.xlane.f32.xlu1 %v744_v34  ;;  %v832_v34 = vrot.slane %v509_v32, 4 }
 0x30d   : > { %1656 = vmatmul.msk.f32.vlgmr.msra.gmra.mxu2 %vm574_vm1, %v607_v35 }
 0x30e   : > { %826 = vmatpush.msra.mxu2 %v806_v36  ;;  %1664 = vmatpush.msk.msrb.mxu3 %vm839_vm14, %v832_v34 }
 0x315   : > { %1659 = vmatmul.msk.f32.vlgmr.msrb.gmra.mxu2 %vm511_vm0, %v670_v18 }
 0x325   : > { %898 = vrot.lane.b32.xlu1 %v2355_v19, %s2057_s8 }
 0x33a   : > { %v580_v37 = vpop.xlane.xlu2 %579 }
 0x33b   : > { %v582_v38 = vsub.f32 %v573_v7, %v580_v37 }
 0x33d   : > { %v585_v39 = vmul.f32 1.442695, %v582_v38 }
 0x33f   : > { %1826 = vpow2.f32 %v585_v39 }
 0x345   : > { %v1827_v40 = vpop.eup %1826 }
 0x346   : > { %v590_v42 = vsel %vm574_vm1, %v1827_v40, 0.0 }
 0x347   : > { %591 = vadd.xlane.f32.xlu0 %v590_v42 }
 0x35b   : > { %778 = vrot.lane.b32.xlu0 %v2455_v10, %s2056_s20 }
 0x363   : > { %1092 = vrot.lane.b32.xlu0 %v2355_v19, %s2058_s25 }
 0x36b   : > { %1004 = vrot.lane.b32.xlu0 %v2455_v10, %s2057_s8 }
 0x373   : > { %1120 = vrot.lane.b32.xlu0 %v2363_v23, %s2058_s25 }
 0x37f   : > { %v746_v44 = vpop.xlane.xlu1 %745 }
 0x380   : > { %1828 = vrcp.f32 %v746_v44  ;;  %v773_v48 = vand.u32 2147483648, %v746_v44  ;;  %v771_v50 = vand.u32 2147483647, %v746_v44  ;;  %vm767_vm7 = vweird.f32 %v746_v44 }
 0x382   : > { %v774_v0 = vor.u32 1.1754944e-38, %v773_v48  ;;  %vm772_vm9 = vcmp.eq.f32.partialorder %v771_v50, 8.507059e+37 }
 0x386   : > { %v1829_v45 = vpop.eup %1828 }
 0x387   : > { %v763_v46 = vmul.f32 %v1829_v45, %v746_v44  ;;  %vm768_vm6 = vweird.f32 %v1829_v45 }
 0x388   : > { %vm769_vm8 = vmor %vm767_vm7, %vm768_vm6 }
 0x389   : > { %v764_v47 = vsub.f32 1.0, %v763_v46 }
 0x38b   : > { %v765_v49 = vmul.f32 %v1829_v45, %v764_v47 }
 0x38d   : > { %v766_v51 = vadd.f32 %v1829_v45, %v765_v49 }
 0x38f   : > { %v770_v19 = vsel %vm769_vm8, %v1829_v45, %v766_v51 }
 0x390   : > { %v775_v43 = vsel %vm772_vm9, %v774_v0, %v770_v19  ;;  %v2473_v52 = vpop.f32.mrf.mxu2 }
 0x391   : > { %v776_v53 = vmul.f32 %v1825_v31, %v775_v43 }
 0x393   : > { %1663 = vmatmul.msk.f32.vlgmr.msra.gmra.mxu2 %vm574_vm1, %v776_v53 }
 0x397   : > { %v899_v54 = vpop.permute.xlu1 %898 }
 0x398   : > { %v694_v55 = vpop.f32.mrf.mxu2  ;;  %1670 = vmatpush.xpose.msk.msrb.mxu2 %vm511_vm0, %v899_v54 }
 0x399   : > { %v725_v56 = vmul.f32 0.5, %v694_v55 }
 0x39b   : > { %1671 = vmatmul.msk.f32.vlgmr.msrb.gmra.mxu2 %vm511_vm0, %v897_v57  ;;  %v727_v59 = vadd.f32 %v2393_v33, %v725_v56 }
 0x39d   : > { %v729_v60 = vsel %vm574_vm1, %v727_v59, -inf }
 0x39e   : > { %730 = vmax.xlane.f32.xlu1 %v729_v60 }
 0x3b7   : > { %926 = vrot.lane.b32.xlu1 %v2363_v23, %s2057_s8 }
 0x3ba   : > { %v592_v62 = vpop.xlane.xlu0 %591 }
 0x3bb   : > { %1830 = vrcp.f32 %v592_v62  ;;  %v619_v6 = vand.u32 2147483648, %v592_v62  ;;  %v617_v8 = vand.u32 2147483647, %v592_v62  ;;  %vm613_vm11 = vweird.f32 %v592_v62 }
 0x3bd   : > { %v620_v11 = vor.u32 1.1754944e-38, %v619_v6  ;;  %vm618_vm13 = vcmp.eq.f32.partialorder %v617_v8, 8.507059e+37 }
 0x3bf   : > { %1090 = vrot.lane.b32.xlu1 %v2359_v20, %s2058_s25 }
 0x3c1   : > { %v1831_v1 = vpop.eup %1830 }
 0x3c2   : > { %v609_v3 = vmul.f32 %v1831_v1, %v592_v62  ;;  %vm614_vm10 = vweird.f32 %v1831_v1 }
 0x3c3   : > { %vm615_vm12 = vmor %vm613_vm11, %vm614_vm10 }
 0x3c4   : > { %v610_v5 = vsub.f32 1.0, %v609_v3 }
 0x3c6   : > { %v611_v7 = vmul.f32 %v1831_v1, %v610_v5 }
 0x3c8   : > { %v612_v9 = vadd.f32 %v1831_v1, %v611_v7 }
 0x3ca   : > { %v616_v12 = vsel %vm615_vm12, %v1831_v1, %v612_v9 }
 0x3cb   : > { %v621_v13 = vsel %vm618_vm13, %v620_v11, %v616_v12 }
 0x3cc   : > { %v622_v23 = vmul.f32 %v1827_v40, %v621_v13 }
 0x3cd   : > { %v779_v14 = vpop.permute.xlu0 %778 }
 0x3ce   : > { %1657 = vmatmul.msk.f32.vlgmr.msra.gmra.mxu1 %vm574_vm1, %v622_v23 }
 0x3cf   : > { %799 = vmatpush.msrb.mxu1 %v779_v14 }
 0x3d1   : > { %1667 = vmatpush.msk.msra.mxu1 %vm839_vm14, %v509_v32 }
 0x3d5   : > { %v1093_v20 = vpop.permute.xlu0 %1092 }
 0x3dd   : > { %v1005_v15 = vpop.permute.xlu0 %1004 }
 0x3de   : > { %1025 = vmatpush.msra.mxu2 %v1005_v15 }
 0x3e5   : > { %v1121_v16 = vpop.permute.xlu0 %1120 }
 0x3e6   : > { %1681 = vmatpush.xpose.msk.msrb.mxu2 %vm511_vm0, %v1121_v16 }
 0x411   : > { %v731_v17 = vpop.xlane.xlu1 %730 }
 0x412   : > { %v735_v18 = vsub.f32 %v727_v59, %v731_v17 }
 0x414   : > { %v737_v21 = vmul.f32 1.442695, %v735_v18 }
 0x416   : > { %1832 = vpow2.f32 %v737_v21  ;;  %v2486_v22 = vpop.f32.mrf.mxu2  ;;  %v510_v21 = vld [vmem:[%s2221_s30 + $0x288] sm:$0xff] }
 0x417   : > { %1676 = vmatpush.msk.msra.mxu0 %vm839_vm14, %v510_v21 }
 0x41c   : > { %v1833_v26 = vpop.eup %1832 }
 0x41d   : > { %v741_v25 = vsel %vm574_vm1, %v1833_v26, 0.0 }
 0x41e   : > { %v921_v28 = vpop.f32.mrf.mxu2  ;;  %742 = vadd.xlane.f32.xlu2 %v741_v25 }
 0x41f   : > { %v952_v29 = vmul.f32 0.5, %v921_v28 }
 0x421   : > { %v954_v30 = vadd.f32 %v2393_v33, %v952_v29 }
 0x423   : > { %v956_v31 = vsel %vm574_vm1, %v954_v30, -inf }
 0x426   : > { %957 = vmax.xlane.f32.xlu2 %v956_v31 }
 0x429   : > { %v927_v19 = vpop.permute.xlu1 %926 }
 0x431   : > { %v1091_v55 = vpop.permute.xlu1 %1090 }
 0x43e   : > { %924 = vrot.lane.b32.xlu2 %v2365_v24, %s2057_s8 }
 0x44b   : > { %v666_v53 = vpop.f32.mrf.mxu1 }
 0x491   : > { %v743_v35 = vpop.xlane.xlu2 %742 }
 0x492   : > { %1834 = vrcp.f32 %v743_v35  ;;  %v758_v42 = vand.u32 2147483648, %v743_v35  ;;  %v756_v46 = vand.u32 2147483647, %v743_v35  ;;  %vm752_vm2 = vweird.f32 %v743_v35 }
 0x494   : > { %v759_v48 = vor.u32 1.1754944e-38, %v758_v42  ;;  %vm757_vm4 = vcmp.eq.f32.partialorder %v756_v46, 8.507059e+37 }
 0x498   : > { %v1835_v36 = vpop.eup %1834 }
 0x499   : > { %v748_v37 = vmul.f32 %v1835_v36, %v743_v35  ;;  %v958_v38 = vpop.xlane.xlu2 %957  ;;  %vm753_vm15 = vweird.f32 %v1835_v36 }
 0x49a   : > { %v962_v39 = vsub.f32 %v954_v30, %v958_v38  ;;  %vm754_vm3 = vmor %vm752_vm2, %vm753_vm15 }
 0x49b   : > { %v749_v40 = vsub.f32 1.0, %v748_v37 }
 0x49c   : > { %v964_v44 = vmul.f32 1.442695, %v962_v39 }
 0x49d   : > { %v750_v45 = vmul.f32 %v1835_v36, %v749_v40 }
 0x49e   : > { %1836 = vpow2.f32 %v964_v44 }
 0x49f   : > { %v751_v47 = vadd.f32 %v1835_v36, %v750_v45 }
 0x4a1   : > { %v755_v49 = vsel %vm754_vm3, %v1835_v36, %v751_v47  ;;  %v925_v54 = vpop.permute.xlu2 %924 }
 0x4a2   : > { %v760_v50 = vsel %vm757_vm4, %v759_v48, %v755_v49 }
 0x4a3   : > { %v761_v51 = vmul.f32 %v1833_v26, %v760_v50 }
 0x4a4   : > { %v1837_v0 = vpop.eup %1836 }
 0x4a5   : > { %1662 = vmatmul.msk.f32.vlgmr.msrb.gmra.mxu1 %vm574_vm1, %v761_v51  ;;  %v968_v43 = vsel %vm574_vm1, %v1837_v0, 0.0 }
 0x4a6   : > { %1672 = vmatpush.xpose.msk.msrb.mxu1 %vm511_vm0, %v927_v19  ;;  %969 = vadd.xlane.f32.xlu2 %v968_v43 }
 0x4ad   : > { %1668 = vmatmul.msk.f32.vlgmr.msra.gmra.mxu1 %vm511_vm0, %v2473_v52 }
 0x4ae   : > { %1679 = vmatpush.xpose.msk.msra.mxu1 %vm511_vm0, %v1093_v20 }
 0x4b5   : > { %1669 = vmatmul.msk.f32.gmra.mxu1 %vm511_vm0, %v666_v53 }
 0x4bd   : > { %1673 = vmatmul.msk.f32.vlgmr.msrb.gmra.mxu1 %vm511_vm0, %v925_v54 }
 0x4be   : > { %1118 = vrot.lane.b32.xlu2 %v2365_v24, %s2058_s25 }
 0x4c5   : > { %1680 = vmatmul.msk.f32.vlgmr.msra.gmra.mxu1 %vm511_vm0, %v1091_v55 }
 0x519   : > { %v970_v56 = vpop.xlane.xlu2 %969 }
 0x51a   : > { %1838 = vrcp.f32 %v970_v56  ;;  %v985_v62 = vand.u32 2147483648, %v970_v56  ;;  %v983_v3 = vand.u32 2147483647, %v970_v56  ;;  %vm979_vm6 = vweird.f32 %v970_v56 }
 0x51c   : > { %v986_v6 = vor.u32 1.1754944e-38, %v985_v62  ;;  %vm984_vm8 = vcmp.eq.f32.partialorder %v983_v3, 8.507059e+37 }
 0x520   : > { %v1839_v57 = vpop.eup %1838 }
 0x521   : > { %v975_v59 = vmul.f32 %v1839_v57, %v970_v56  ;;  %vm980_vm5 = vweird.f32 %v1839_v57  ;;  %v1119_v12 = vpop.permute.xlu2 %1118 }
 0x522   : > { %v801_v60 = vpop.f32.mrf.mxu1  ;;  %vm981_vm7 = vmor %vm979_vm6, %vm980_vm5 }
 0x523   : > { %v976_v52 = vsub.f32 1.0, %v975_v59  ;;  %1665 = vmatmul.msk.f32.vlgmr.msrb.gmra.mxu3 %vm511_vm0, %v801_v60 }
 0x525   : > { %v977_v1 = vmul.f32 %v1839_v57, %v976_v52 }
 0x527   : > { %v978_v5 = vadd.f32 %v1839_v57, %v977_v1 }
 0x529   : > { %v982_v24 = vsel %vm981_vm7, %v1839_v57, %v978_v5 }
 0x52a   : > { %v987_v7 = vsel %vm984_vm8, %v986_v6, %v982_v24  ;;  %v2508_v8 = vpop.f32.mrf.mxu1 }
 0x52b   : > { %1666 = vmatmul.msk.f32.gmra.mxu3 %vm511_vm0, %v2486_v22  ;;  %v988_v9 = vmul.f32 %v1837_v0, %v987_v7  ;;  %v1250_v22 = vrot.slane %v510_v21, 4 }
 0x52d   : > { %1674 = vmatmul.msk.f32.vlgmr.msra.gmra.mxu2 %vm574_vm1, %v988_v9 }
 0x52e   : > { %1685 = vmatpush.msk.msra.mxu2 %vm839_vm14, %v1250_v22 }
 0x532   : > { %v2513_v11 = vpop.f32.mrf.mxu1 }
 0x535   : > { %1682 = vmatmul.msk.f32.vlgmr.msrb.gmra.mxu2 %vm511_vm0, %v1119_v12 }
 0x53a   : > { %v949_v13 = vpop.f32.mrf.mxu1 }
 0x53b   : > { %v953_v23 = vmul.f32 0.5, %v949_v13 }
 0x53d   : > { %v955_v14 = vadd.f32 %v2430_v58, %v953_v23  ;;  %v1313_v23 = vld [vmem:[%s2221_s30 + $0x378] sm:$0xff] }
 0x53e   : > { %1316 = vmatpush.msrb.mxu0 %v1313_v23  ;;  %v1342_v23 = vld [vmem:[%s2221_s30 + $0x388] sm:$0xff] }
 0x53f   : > { %v959_v20 = vsel %vm574_vm1, %v955_v14, -inf }
 0x540   : > { %960 = vmax.xlane.f32.xlu1 %v959_v20  ;;  %v1311_v20 = vld [vmem:[%s2221_s30 + $0x368] sm:$0xff] }
 0x542   : > { %v1115_v15 = vpop.f32.mrf.mxu1 }
 0x543   : > { %v1146_v16 = vmul.f32 0.5, %v1115_v15 }
 0x545   : > { %v1148_v17 = vadd.f32 %v2393_v33, %v1146_v16 }
 0x547   : > { %v1150_v18 = vsel %vm574_vm1, %v1148_v17, -inf }
 0x548   : > { %1151 = vmax.xlane.f32.xlu0 %v1150_v18 }
 0x5a6   : > { %v859_v16 = vpop.f32.mrf.mxu3 }
 0x5b0   : > { %v1027_v26 = vpop.f32.mrf.mxu2 }
 0x5b1   : > { %1677 = vmatmul.msk.f32.vlgmr.msra.gmra.mxu0 %vm511_vm0, %v1027_v26 }
 0x5b3   : > { %v961_v25 = vpop.xlane.xlu1 %960 }
 0x5b4   : > { %v963_v28 = vsub.f32 %v955_v14, %v961_v25  ;;  %v1312_v14 = vld [vmem:[%s2221_s30 + $0x370] sm:$0xff] }
 0x5b5   : > { %1317 = vmatpush.msrb.mxu0 %v1312_v14  ;;  %v1341_v14 = vld [vmem:[%s2221_s30 + $0x380] sm:$0xff] }
 0x5b6   : > { %v966_v29 = vmul.f32 1.442695, %v963_v28 }
 0x5b7   : > { %1318 = vmatpush.msrb.mxu0 %v1311_v20  ;;  %v1407_v20 = vld [vmem:[%s2221_s30 + $0x478] sm:$0xff] }
 0x5b8   : > { %1840 = vpow2.f32 %v966_v29  ;;  %v1143_v30 = vpop.f32.mrf.mxu2 }
 0x5b9   : > { %v1147_v31 = vmul.f32 0.5, %v1143_v30 }
 0x5bb   : > { %v1152_v32 = vpop.xlane.xlu0 %1151  ;;  %v1149_v33 = vadd.f32 %v2430_v58, %v1147_v31 }
 0x5bc   : > { %v1156_v34 = vsub.f32 %v1148_v17, %v1152_v32 }
 0x5bd   : > { %v1153_v35 = vsel %vm574_vm1, %v1149_v33, -inf }
 0x5be   : > { %v1841_v36 = vpop.eup %1840  ;;  %v1158_v37 = vmul.f32 1.442695, %v1156_v34  ;;  %1154 = vmax.xlane.f32.xlu2 %v1153_v35  ;;  %v1310_v35 = vld [vmem:[%s2221_s30 + $0x360] sm:$0xff] }
 0x5bf   : > { %v971_v38 = vsel %vm574_vm1, %v1841_v36, 0.0  ;;  %1319 = vmatpush.msrb.mxu0 %v1310_v35  ;;  %v1401_v35 = vld [vmem:[%s2221_s30 + $0x448] sm:$0xff] }
 0x5c0   : > { %1842 = vpow2.f32 %v1158_v37  ;;  %972 = vadd.xlane.f32.xlu1 %v971_v38  ;;  %v1308_v37 = vld [vmem:[%s2221_s30 + $0x350] sm:$0xff]  ;;  %v1307_v38 = vld [vmem:[%s2221_s30 + $0x348] sm:$0xff] }
 0x5c6   : > { %v1843_v39 = vpop.eup %1842 }
 0x5c7   : > { %v1162_v40 = vsel %vm574_vm1, %v1843_v39, 0.0 }
 0x5c8   : > { %1163 = vadd.xlane.f32.xlu0 %v1162_v40  ;;  %v1305_v40 = vld [vmem:[%s2221_s30 + $0x338] sm:$0xff] }
 0x5d6   : > { %1030 = vrot.lane.b32.xlu2 %v2377_v27, %s2057_s8 }
 0x5dc   : > { %1198 = vrot.lane.b32.xlu0 %v2455_v10, %s2058_s25 }
 0x631   : > { %v1155_v58 = vpop.xlane.xlu2 %1154 }
 0x632   : > { %v1157_v42 = vsub.f32 %v1149_v33, %v1155_v58  ;;  %v1304_v58 = vld [vmem:[%s2221_s30 + $0x330] sm:$0xff] }
 0x633   : > { %v973_v44 = vpop.xlane.xlu1 %972 }
 0x634   : > { %v1160_v45 = vmul.f32 1.442695, %v1157_v42  ;;  %1844 = vrcp.f32 %v973_v44  ;;  %v1000_v19 = vand.u32 2147483648, %v973_v44  ;;  %v998_v10 = vand.u32 2147483647, %v973_v44  ;;  %v1303_v42 = vld [vmem:[%s2221_s30 + $0x328] sm:$0xff] }
 0x635   : > { %vm994_vm10 = vweird.f32 %v973_v44 }
 0x636   : > { %1846 = vpow2.f32 %v1160_v45  ;;  %v1001_v55 = vor.u32 1.1754944e-38, %v1000_v19  ;;  %vm999_vm12 = vcmp.eq.f32.partialorder %v998_v10, 8.507059e+37  ;;  %v1301_v45 = vld [vmem:[%s2221_s30 + $0x318] sm:$0xff]  ;;  %v1082_v10 = vpop.f32.mrf.mxu0 }
 0x639   : > { %v1031_v46 = vpop.permute.xlu2 %1030 }
 0x63a   : > { %v1845_v47 = vpop.eup %1844  ;;  %1051 = vmatpush.msra.mxu3 %v1031_v46  ;;  %v1300_v46 = vld [vmem:[%s2221_s30 + $0x310] sm:$0xff] }
 0x63b   : > { %v990_v48 = vmul.f32 %v1845_v47, %v973_v44  ;;  %v1164_v49 = vpop.xlane.xlu0 %1163  ;;  %vm995_vm9 = vweird.f32 %v1845_v47  ;;  %v1302_v44 = vld [vmem:[%s2221_s30 + $0x320] sm:$0xff] }
 0x63c   : > { %v1847_v50 = vpop.eup %1846  ;;  %1848 = vrcp.f32 %v1164_v49  ;;  %vm996_vm11 = vmor %vm994_vm10, %vm995_vm9  ;;  %v1179_v62 = vand.u32 2147483648, %v1164_v49  ;;  %v1177_v3 = vand.u32 2147483647, %v1164_v49  ;;  %vm1173_vm14 = vweird.f32 %v1164_v49 }
 0x63d   : > { %v991_v51 = vsub.f32 1.0, %v990_v48  ;;  %v1165_v0 = vsel %vm574_vm1, %v1847_v50, 0.0  ;;  %v1298_v48 = vld [vmem:[%s2221_s30 + $0x300] sm:$0xff] }
 0x63e   : > { %1166 = vadd.xlane.f32.xlu1 %v1165_v0  ;;  %v1180_v6 = vor.u32 1.1754944e-38, %v1179_v62  ;;  %vm1178_vm2 = vcmp.eq.f32.partialorder %v1177_v3, 8.507059e+37  ;;  %v1353_v0 = vld [vmem:[%s2221_s30 + $0x3e0] sm:$0xff]  ;;  %v1351_v3 = vld [vmem:[%s2221_s30 + $0x3d0] sm:$0xff] }
 0x63f   : > { %v992_v43 = vmul.f32 %v1845_v47, %v991_v51  ;;  %v1354_v51 = vld [vmem:[%s2221_s30 + $0x3e8] sm:$0xff] }
 0x640   : > { %v1807_v62 = vld [vmem:[%s2227_s6 + $0xa] ss:$0 sm:$0xff] }
 0x641   : > { %v993_v53 = vadd.f32 %v1845_v47, %v992_v43  ;;  %v324_v43 = vadd.f32 %v2439_v61, %v2436_v41  ;;  %v1808_v61 = vld [vmem:[%s2227_s6 + $0xb] ss:$0 sm:$0xff] }
 0x642   : > { %v1849_v54 = vpop.eup %1848 }
 0x643   : > { %v997_v56 = vsel %vm996_vm11, %v1845_v47, %v993_v53  ;;  %v1169_v57 = vmul.f32 %v1849_v54, %v1164_v49  ;;  %vm1174_vm13 = vweird.f32 %v1849_v54  ;;  %v1299_v47 = vld [vmem:[%s2221_s30 + $0x308] sm:$0xff]  ;;  %v1356_v49 = vld [vmem:[%s2221_s30 + $0x3f8] sm:$0xff]  ;;  %v891_v53 = vadd.f32 %v2508_v8, %v859_v16 }
 0x644   : > { %v1002_v59 = vsel %vm999_vm12, %v1001_v55, %v997_v56  ;;  %vm1175_vm15 = vmor %vm1173_vm14, %vm1174_vm13  ;;  %v1806_v56 = vld [vmem:[%s2227_s6 + $0x9] ss:$0 sm:$0xff] }
 0x645   : > { %v1170_v60 = vsub.f32 1.0, %v1169_v57  ;;  %v1003_v52 = vmul.f32 %v1841_v36, %v1002_v59  ;;  %v1309_v36 = vld [vmem:[%s2221_s30 + $0x358] sm:$0xff]  ;;  %v1088_v55 = vadd.f32 %v1082_v10, %v891_v53 }
 0x646   : > { %1320 = vmatpush.msrb.mxu0 %v1309_v36  ;;  %v1400_v36 = vld [vmem:[%s2221_s30 + $0x440] sm:$0xff] }
 0x647   : > { %v1171_v1 = vmul.f32 %v1849_v54, %v1170_v60  ;;  %1675 = vmatmul.msk.f32.vlgmr.msra.gmra.mxu3 %vm574_vm1, %v1003_v52 }
 0x648   : > { %1321 = vmatpush.msrb.mxu0 %v1308_v37  ;;  %v1399_v37 = vld [vmem:[%s2221_s30 + $0x438] sm:$0xff] }
 0x649   : > { %v1172_v5 = vadd.f32 %v1849_v54, %v1171_v1 }
 0x64a   : > { %1322 = vmatpush.msrb.mxu0 %v1307_v38  ;;  %v1398_v38 = vld [vmem:[%s2221_s30 + $0x430] sm:$0xff] }
 0x64b   : > { %v1176_v24 = vsel %vm1175_vm15, %v1849_v54, %v1172_v5  ;;  %v331_v54 = vmul.f32 %v2442_v63, %v324_v43  ;;  %v1352_v63 = vld [vmem:[%s2221_s30 + $0x3d8] sm:$0xff]  ;;  %v1350_v5 = vld [vmem:[%s2221_s30 + $0x3c8] sm:$0xff] }
 0x64c   : > { %v1181_v7 = vsel %vm1178_vm2, %v1180_v6, %v1176_v24  ;;  %v1348_v6 = vld [vmem:[%s2221_s30 + $0x3b8] sm:$0xff]  ;;  %v1347_v24 = vld [vmem:[%s2221_s30 + $0x3b0] sm:$0xff]  ;;  %v1810_v43 = vld [vmem:[%s2227_s6 + $0xd] ss:$0 sm:$0xff] }
 0x64d   : > { %v1182_v9 = vmul.f32 %v1843_v39, %v1181_v7  ;;  %v1306_v39 = vld [vmem:[%s2221_s30 + $0x340] sm:$0xff]  ;;  %v335_v60 = vadd.f32 %v2446_v2, %v331_v54  ;;  %v1346_v7 = vld [vmem:[%s2221_s30 + $0x3a8] sm:$0xff] }
 0x64e   : > { %v1199_v12 = vpop.permute.xlu0 %1198  ;;  %1323 = vmatpush.msrb.mxu0 %v1306_v39  ;;  %v1349_v2 = vld [vmem:[%s2221_s30 + $0x3c0] sm:$0xff]  ;;  %v1397_v39 = vld [vmem:[%s2221_s30 + $0x428] sm:$0xff] }
 0x64f   : > { %1219 = vmatpush.msrb.mxu3 %v1199_v12  ;;  %v1344_v12 = vld [vmem:[%s2221_s30 + $0x398] sm:$0xff]  ;;  %v1811_v54 = vld [vmem:[%s2227_s6 + $0xe] ss:$0 sm:$0xff] }
 0x650   : > { %1683 = vmatmul.msk.f32.vlgmr.msrb.gmra.mxu3 %vm574_vm1, %v1182_v9  ;;  %1324 = vmatpush.msrb.mxu0 %v1305_v40  ;;  %v1345_v9 = vld [vmem:[%s2221_s30 + $0x3a0] sm:$0xff] }
 0x651   : > { %1359 = vmatpush.msra.mxu3 %v1356_v49  ;;  %v1396_v40 = vld [vmem:[%s2221_s30 + $0x420] sm:$0xff] }
 0x652   : > { %1325 = vmatpush.msrb.mxu0 %v1304_v58  ;;  %v1395_v58 = vld [vmem:[%s2221_s30 + $0x418] sm:$0xff] }
 0x654   : > { %1326 = vmatpush.msrb.mxu0 %v1303_v42  ;;  %v1394_v42 = vld [vmem:[%s2221_s30 + $0x410] sm:$0xff] }
 0x656   : > { %1327 = vmatpush.msrb.mxu0 %v1302_v44  ;;  %v1393_v44 = vld [vmem:[%s2221_s30 + $0x408] sm:$0xff] }
 0x657   : > { %1224 = vrot.lane.b32.xlu1 %v2377_v27, %s2058_s25  ;;  %v2540_v27 = vpop.f32.mrf.mxu3 }
 0x658   : > { %1328 = vmatpush.msrb.mxu0 %v1301_v45  ;;  %v1392_v45 = vld [vmem:[%s2221_s30 + $0x400] sm:$0xff] }
 0x65a   : > { %1329 = vmatpush.msrb.mxu0 %v1300_v46  ;;  %v1450_v46 = vld [vmem:[%s2221_s30 + $0x4f8] sm:$0xff] }
 0x65b   : > { %1453 = vmatpush.msrb.mxu2 %v1450_v46 }
 0x65c   : > { %1330 = vmatpush.msrb.mxu0 %v1299_v47  ;;  %v1449_v47 = vld [vmem:[%s2221_s30 + $0x4f0] sm:$0xff] }
 0x65d   : > { %1454 = vmatpush.msrb.mxu2 %v1449_v47 }
 0x65e   : > { %1331 = vmatpush.msrb.mxu0 %v1298_v48  ;;  %v1448_v48 = vld [vmem:[%s2221_s30 + $0x4e8] sm:$0xff] }
 0x65f   : > { %1455 = vmatpush.msrb.mxu2 %v1448_v48 }
 0x6b1   : > { %v1167_v13 = vpop.xlane.xlu1 %1166 }
 0x6b2   : > { %1850 = vrcp.f32 %v1167_v13  ;;  %v1194_v26 = vand.u32 2147483648, %v1167_v13  ;;  %vm1188_vm4 = vweird.f32 %v1167_v13  ;;  %v1192_v25 = vand.u32 2147483647, %v1167_v13 }
 0x6b4   : > { %v1195_v29 = vor.u32 1.1754944e-38, %v1194_v26  ;;  %vm1193_vm6 = vcmp.eq.f32.partialorder %v1192_v25, 8.507059e+37 }
 0x6b8   : > { %v1851_v15 = vpop.eup %1850 }
 0x6b9   : > { %v1184_v17 = vmul.f32 %v1851_v15, %v1167_v13  ;;  %vm1189_vm3 = vweird.f32 %v1851_v15  ;;  %v1343_v13 = vld [vmem:[%s2221_s30 + $0x390] sm:$0xff] }
 0x6ba   : > { %vm1190_vm5 = vmor %vm1188_vm4, %vm1189_vm3 }
 0x6bb   : > { %v1185_v18 = vsub.f32 1.0, %v1184_v17  ;;  %v894_v17 = vadd.f32 %v2513_v11, %v2540_v27 }
 0x6bd   : > { %v1186_v21 = vmul.f32 %v1851_v15, %v1185_v18 }
 0x6bf   : > { %v1187_v22 = vadd.f32 %v1851_v15, %v1186_v21 }
 0x6c1   : > { %v1191_v28 = vsel %vm1190_vm5, %v1851_v15, %v1187_v22  ;;  %v1406_v15 = vld [vmem:[%s2221_s30 + $0x470] sm:$0xff] }
 0x6c2   : > { %v1196_v30 = vsel %vm1193_vm6, %v1195_v29, %v1191_v28 }
 0x6c3   : > { %v1197_v32 = vmul.f32 %v1847_v50, %v1196_v30  ;;  %v1355_v50 = vld [vmem:[%s2221_s30 + $0x3f0] sm:$0xff]  ;;  %v1809_v30 = vld [vmem:[%s2227_s6 + $0xc] ss:$0 sm:$0xff] }
 0x6c4   : > { %1360 = vmatpush.msra.mxu3 %v1355_v50  ;;  %v1447_v50 = vld [vmem:[%s2221_s30 + $0x4e0] sm:$0xff] }
 0x6c5   : > { %1456 = vmatpush.msrb.mxu2 %v1447_v50  ;;  %v1817_v50 = vld [vmem:[%s2227_s6 + $0x14] ss:$0 sm:$0xff] }
 0x6c6   : > { %1361 = vmatpush.msra.mxu3 %v1354_v51 }
 0x6c8   : > { %1362 = vmatpush.msra.mxu3 %v1353_v0  ;;  %v1446_v0 = vld [vmem:[%s2221_s30 + $0x4d8] sm:$0xff] }
 0x6c9   : > { %v1225_v31 = vpop.permute.xlu1 %1224  ;;  %1457 = vmatpush.msrb.mxu2 %v1446_v0 }
 0x6ca   : > { %v1053_v33 = vpop.f32.mrf.mxu3  ;;  %1245 = vmatpush.msrb.mxu1 %v1225_v31  ;;  %1363 = vmatpush.msra.mxu3 %v1352_v63  ;;  %v1438_v63 = vld [vmem:[%s2221_s30 + $0x498] sm:$0xff] }
 0x6cb   : > { %1678 = vmatmul.msk.f32.gmra.mxu0 %vm511_vm0, %v1053_v33  ;;  %1684 = vmatmul.msk.f32.vlgmr.msrb.gmra.mxu1 %vm574_vm1, %v1197_v32  ;;  %v1405_v32 = vld [vmem:[%s2221_s30 + $0x468] sm:$0xff]  ;;  %v1404_v33 = vld [vmem:[%s2221_s30 + $0x460] sm:$0xff] }
 0x6cc   : > { %1364 = vmatpush.msra.mxu3 %v1351_v3  ;;  %1410 = vmatpush.msra.mxu1 %v1407_v20  ;;  %v1437_v3 = vld [vmem:[%s2221_s30 + $0x490] sm:$0xff] }
 0x6ce   : > { %1365 = vmatpush.msra.mxu3 %v1350_v5  ;;  %1411 = vmatpush.msra.mxu1 %v1406_v15  ;;  %v1436_v5 = vld [vmem:[%s2221_s30 + $0x488] sm:$0xff] }
 0x6d0   : > { %1366 = vmatpush.msra.mxu3 %v1349_v2  ;;  %1412 = vmatpush.msra.mxu1 %v1405_v32  ;;  %v1435_v2 = vld [vmem:[%s2221_s30 + $0x480] sm:$0xff]  ;;  %v1487_v32 = vld [vmem:[%s2221_s30 + $0x508] sm:$0xff] }
 0x6d2   : > { %1367 = vmatpush.msra.mxu3 %v1348_v6  ;;  %1413 = vmatpush.msra.mxu1 %v1404_v33  ;;  %v1501_v6 = vld [vmem:[%s2221_s30 + $0x578] sm:$0xff]  ;;  %v1486_v33 = vld [vmem:[%s2221_s30 + $0x500] sm:$0xff] }
 0x6d3   : > { %v1221_v34 = vpop.f32.mrf.mxu3  ;;  %1504 = vmatpush.msra.mxu0 %v1501_v6 }
 0x6d4   : > { %1686 = vmatmul.msk.f32.vlgmr.msra.gmra.mxu2 %vm511_vm0, %v1221_v34  ;;  %1368 = vmatpush.msra.mxu3 %v1347_v24  ;;  %v1402_v34 = vld [vmem:[%s2221_s30 + $0x450] sm:$0xff] }
 0x6d5   : > { %v1500_v24 = vld [vmem:[%s2221_s30 + $0x570] sm:$0xff] }
 0x6d6   : > { %1369 = vmatpush.msra.mxu3 %v1346_v7  ;;  %1505 = vmatpush.msra.mxu0 %v1500_v24 }
 0x6d8   : > { %1370 = vmatpush.msra.mxu3 %v1345_v9 }
 0x6da   : > { %1371 = vmatpush.msra.mxu3 %v1344_v12 }
 0x6dc   : > { %1372 = vmatpush.msra.mxu3 %v1343_v13 }
 0x6de   : > { %1373 = vmatpush.msra.mxu3 %v1342_v23 }
 0x6e0   : > { %1374 = vmatpush.msra.mxu3 %v1341_v14  ;;  %v1813_v14 = vld [vmem:[%s2227_s6 + $0x10] ss:$0 sm:$0xff] }
 0x748   : > { %v1247_v19 = vpop.f32.mrf.mxu1  ;;  %v1085_v16 = vpop.f32.mrf.mxu0 }
 0x749   : > { %1687 = vmatmul.msk.f32.gmra.mxu2 %vm511_vm0, %v1247_v19  ;;  %v1089_v18 = vadd.f32 %v1085_v16, %v894_v17  ;;  %v1499_v17 = vld [vmem:[%s2221_s30 + $0x568] sm:$0xff] }
 0x74a   : > { %1506 = vmatpush.msra.mxu0 %v1499_v17 }
 0x757   : > { %v1276_v57 = vpop.f32.mrf.mxu2 }
 0x758   : > { %v1282_v59 = vadd.f32 %v1276_v57, %v1088_v55 }
 0x75a   : > { %v1286_v52 = vadd.f32 %v1806_v56, %v1282_v59 }
 0x75c   : > { %v1288_v41 = vadd.f32 %v1286_v52, %v335_v60  ;;  %v1445_v60 = vld [vmem:[%s2221_s30 + $0x4d0] sm:$0xff]  ;;  %v1444_v52 = vld [vmem:[%s2221_s30 + $0x4c8] sm:$0xff] }
 0x75d   : > { %1458 = vmatpush.msrb.mxu2 %v1445_v60 }
 0x75e   : > { %v1292_v1 = vmul.f32 %v1807_v62, %v1288_v41  ;;  %v1442_v41 = vld [vmem:[%s2221_s30 + $0x4b8] sm:$0xff] }
 0x75f   : > { %1459 = vmatpush.msrb.mxu2 %v1444_v52 }
 0x760   : > { %v2571_v8 = vadd.f32 %v1808_v61, %v1292_v1  ;;  %v1440_v1 = vld [vmem:[%s2221_s30 + $0x4a8] sm:$0xff] }
 0x762   : > { %1332 = vmatmul.f32.vlgmr.msrb.gmra.mxu0 %v2571_v8 }
 0x7cc   : > { %v1279_v21 = vpop.f32.mrf.mxu2 }
 0x7cd   : > { %v1283_v22 = vadd.f32 %v1279_v21, %v1089_v18  ;;  %v1498_v18 = vld [vmem:[%s2221_s30 + $0x560] sm:$0xff]  ;;  %v1497_v21 = vld [vmem:[%s2221_s30 + $0x558] sm:$0xff] }
 0x7ce   : > { %1507 = vmatpush.msra.mxu0 %v1498_v18 }
 0x7cf   : > { %v1287_v26 = vadd.f32 %v1806_v56, %v1283_v22  ;;  %v1812_v56 = vld [vmem:[%s2227_s6 + $0xf] ss:$0 sm:$0xff]  ;;  %v1496_v22 = vld [vmem:[%s2221_s30 + $0x550] sm:$0xff] }
 0x7d0   : > { %1508 = vmatpush.msra.mxu0 %v1497_v21 }
 0x7d1   : > { %v1289_v25 = vadd.f32 %v1287_v26, %v2450_v4  ;;  %v1403_v4 = vld [vmem:[%s2221_s30 + $0x458] sm:$0xff]  ;;  %v1495_v26 = vld [vmem:[%s2221_s30 + $0x548] sm:$0xff] }
 0x7d2   : > { %1414 = vmatpush.msra.mxu1 %v1403_v4  ;;  %1509 = vmatpush.msra.mxu0 %v1496_v22 }
 0x7d3   : > { %v1293_v28 = vmul.f32 %v1807_v62, %v1289_v25  ;;  %v1443_v62 = vld [vmem:[%s2221_s30 + $0x4c0] sm:$0xff] }
 0x7d4   : > { %1415 = vmatpush.msra.mxu1 %v1402_v34  ;;  %1460 = vmatpush.msrb.mxu2 %v1443_v62  ;;  %v1494_v25 = vld [vmem:[%s2221_s30 + $0x540] sm:$0xff] }
 0x7d5   : > { %v2591_v29 = vadd.f32 %v1808_v61, %v1293_v28  ;;  %v1441_v61 = vld [vmem:[%s2221_s30 + $0x4b0] sm:$0xff]  ;;  %1510 = vmatpush.msra.mxu0 %v1495_v26  ;;  %v1493_v28 = vld [vmem:[%s2221_s30 + $0x538] sm:$0xff] }
 0x7d6   : > { %1416 = vmatpush.msra.mxu1 %v1401_v35  ;;  %1461 = vmatpush.msrb.mxu2 %v1442_v41 }
 0x7d7   : > { %1335 = vmatmul.f32.gmra.mxu0 %v2591_v29 }
 0x7d8   : > { %1417 = vmatpush.msra.mxu1 %v1400_v36  ;;  %1462 = vmatpush.msrb.mxu2 %v1441_v61  ;;  %v1814_v36 = vld [vmem:[%s2227_s6 + $0x11] ss:$0 sm:$0xff] }
 0x7d9   : > { %1511 = vmatpush.msra.mxu0 %v1494_v25 }
 0x7da   : > { %1418 = vmatpush.msra.mxu1 %v1399_v37  ;;  %1463 = vmatpush.msrb.mxu2 %v1440_v1 }
 0x7db   : > { %1512 = vmatpush.msra.mxu0 %v1493_v28 }
 0x7dc   : > { %1419 = vmatpush.msra.mxu1 %v1398_v38 }
 0x7de   : > { %1420 = vmatpush.msra.mxu1 %v1397_v39  ;;  %v1815_v39 = vld [vmem:[%s2227_s6 + $0x12] ss:$0 sm:$0xff] }
 0x7df   : > { %v1333_v31 = vpop.f32.mrf.mxu0 }
 0x7e0   : > { %v1334_v11 = vadd.f32 %v1809_v30, %v1333_v31  ;;  %1421 = vmatpush.msra.mxu1 %v1396_v40  ;;  %v1490_v31 = vld [vmem:[%s2221_s30 + $0x520] sm:$0xff] }
 0x7e2   : > { %v1339_v27 = vmax.f32 %v1334_v11, 0.0  ;;  %1422 = vmatpush.msra.mxu1 %v1395_v58  ;;  %v1489_v11 = vld [vmem:[%s2221_s30 + $0x518] sm:$0xff]  ;;  %v1816_v58 = vld [vmem:[%s2227_s6 + $0x13] ss:$0 sm:$0xff] }
 0x7e4   : > { %1375 = vmatmul.f32.vlgmr.msra.gmra.mxu3 %v1339_v27  ;;  %1423 = vmatpush.msra.mxu1 %v1394_v42  ;;  %v1488_v27 = vld [vmem:[%s2221_s30 + $0x510] sm:$0xff] }
 0x7e6   : > { %1424 = vmatpush.msra.mxu1 %v1393_v44 }
 0x7e8   : > { %1425 = vmatpush.msra.mxu1 %v1392_v45 }
 0x854   : > { %v1336_v49 = vpop.f32.mrf.mxu0 }
 0x855   : > { %v1337_v51 = vadd.f32 %v1809_v30, %v1336_v49  ;;  %v1491_v30 = vld [vmem:[%s2221_s30 + $0x528] sm:$0xff] }
 0x857   : > { %v1340_v19 = vmax.f32 %v1337_v51, 0.0 }
 0x859   : > { %1378 = vmatmul.f32.gmra.mxu3 %v1340_v19  ;;  %v1818_v19 = vld [vmem:[%s2227_s6 + $0x15] ss:$0 sm:$0xff] }
 0x867   : > { %v1376_v10 = vpop.f32.mrf.mxu3 }
 0x868   : > { %v1377_v53 = vadd.f32 %v1810_v43, %v1376_v10 }
 0x86a   : > { %v1382_v55 = vadd.f32 %v1377_v53, %v2571_v8  ;;  %v1439_v8 = vld [vmem:[%s2221_s30 + $0x4a0] sm:$0xff]  ;;  %v1819_v53 = vld [vmem:[%s2227_s6 + $0x16] ss:$0 sm:$0xff] }
 0x86b   : > { %1464 = vmatpush.msrb.mxu2 %v1439_v8 }
 0x86c   : > { %v1386_v57 = vmul.f32 %v1811_v54, %v1382_v55 }
 0x86d   : > { %1465 = vmatpush.msrb.mxu2 %v1438_v63 }
 0x86e   : > { %v2618_v59 = vadd.f32 %v1812_v56, %v1386_v57 }
 0x86f   : > { %1466 = vmatpush.msrb.mxu2 %v1437_v3 }
 0x870   : > { %1426 = vmatmul.f32.vlgmr.msra.gmra.mxu1 %v2618_v59 }
 0x871   : > { %1467 = vmatpush.msrb.mxu2 %v1436_v5 }
 0x873   : > { %1468 = vmatpush.msrb.mxu2 %v1435_v2 }
 0x8dc   : > { %v1379_v7 = vpop.f32.mrf.mxu3 }
 0x8dd   : > { %v1380_v9 = vadd.f32 %v1810_v43, %v1379_v7  ;;  %v1852_v43 = vld [vmem:[#allocation2] sm:$0xff] }
 0x8df   : > { %v1383_v12 = vadd.f32 %v1380_v9, %v2591_v29  ;;  %v1492_v29 = vld [vmem:[%s2221_s30 + $0x530] sm:$0xff] }
 0x8e0   : > { %1513 = vmatpush.msra.mxu0 %v1492_v29 }
 0x8e1   : > { %v1387_v13 = vmul.f32 %v1811_v54, %v1383_v12 }
 0x8e2   : > { %1514 = vmatpush.msra.mxu0 %v1491_v30 }
 0x8e3   : > { %v1391_v23 = vadd.f32 %v1812_v56, %v1387_v13 }
 0x8e4   : > { %1515 = vmatpush.msra.mxu0 %v1490_v31 }
 0x8e5   : > { %1429 = vmatmul.f32.gmra.mxu1 %v1391_v23 }
 0x8e6   : > { %1516 = vmatpush.msra.mxu0 %v1489_v11 }
 0x8e8   : > { %1517 = vmatpush.msra.mxu0 %v1488_v27 }
 0x8ea   : > { %1518 = vmatpush.msra.mxu0 %v1487_v32 }
 0x8ec   : > { %1519 = vmatpush.msra.mxu0 %v1486_v33 }
 0x8ed   : > { %v1427_v20 = vpop.f32.mrf.mxu1 }
 0x8ee   : > { %v1428_v15 = vadd.f32 %v1813_v14, %v1427_v20 }
 0x8f0   : > { %v1433_v16 = vmax.f32 %v1428_v15, 0.0 }
 0x8f2   : > { %1469 = vmatmul.f32.vlgmr.msrb.gmra.mxu2 %v1433_v16 }
 0x962   : > { %v1430_v4 = vpop.f32.mrf.mxu1 }
 0x963   : > { %v1431_v34 = vadd.f32 %v1813_v14, %v1430_v4 }
 0x965   : > { %v1434_v35 = vmax.f32 %v1431_v34, 0.0 }
 0x967   : > { %1472 = vmatmul.f32.gmra.mxu2 %v1434_v35 }
 0x975   : > { %v1470_v37 = vpop.f32.mrf.mxu2 }
 0x976   : > { %v1471_v38 = vadd.f32 %v1814_v36, %v1470_v37 }
 0x978   : > { %v1476_v40 = vadd.f32 %v1471_v38, %v2618_v59  ;;  %v1853_v59 = vld [vmem:[#allocation2 + $0x8] sm:$0xff] }
 0x97a   : > { %v1480_v42 = vmul.f32 %v1815_v39, %v1476_v40 }
 0x97c   : > { %v1484_v44 = vadd.f32 %v1816_v58, %v1480_v42 }
 0x97e   : > { %1520 = vmatmul.f32.vlgmr.msra.gmra.mxu0 %v1484_v44 }
 0x9ea   : > { %v1473_v45 = vpop.f32.mrf.mxu2 }
 0x9eb   : > { %v1474_v46 = vadd.f32 %v1814_v36, %v1473_v45 }
 0x9ed   : > { %v1477_v47 = vadd.f32 %v1474_v46, %v1391_v23 }
 0x9ef   : > { %v1481_v48 = vmul.f32 %v1815_v39, %v1477_v47 }
 0x9f1   : > { %v1485_v49 = vadd.f32 %v1816_v58, %v1481_v48 }
 0x9f3   : > { %1523 = vmatmul.f32.gmra.mxu0 %v1485_v49 }
 0x9fb   : > { %v1521_v51 = vpop.f32.mrf.mxu0 }
 0x9fc   : > { %v1522_v0 = vadd.f32 %v1817_v50, %v1521_v51 }
 0x9fe   : > { %v1527_v10 = vadd.f32 %v1852_v43, %v1522_v0 }
 0xa00   : > { %v1531_v54 = vmul.f32 %v1818_v19, %v1527_v10 }
 0xa02   : > { %v1535_v55 = vadd.f32 %v1819_v53, %v1531_v54 }
 0xa04   : > { %1537 = vst [vmem:[#allocation2] sm:$0xff] %v1535_v55 }
 0xa05   : > { %1539 = vst [vmem:[#allocation10] sm:$0xff] %v1535_v55 }
 0xa70   : > { %v1524_v56 = vpop.f32.mrf.mxu0 }
 0xa71   : > { %v1525_v57 = vadd.f32 %v1817_v50, %v1524_v56 }
 0xa73   : > { %v1528_v60 = vadd.f32 %v1853_v59, %v1525_v57 }
 0xa75   : > { %v1532_v52 = vmul.f32 %v1818_v19, %v1528_v60 }
 0xa77   : > { %v1536_v62 = vadd.f32 %v1819_v53, %v1532_v52 }
 0xa79   : > { %1538 = vst [vmem:[#allocation2 + $0x8] sm:$0xff] %v1536_v62 }
 0xa7a   : > { %1540 = vst [vmem:[#allocation10 + $0x8] sm:$0xff] %v1536_v62 }
 0xa7b   : > { %1727 = dma.vmem_to_hbm [thread:$0]  (%p1749_p1), %s1547_s29, 256, %s1549_s10, [#allocation5], %s2060_s14, %s2060_s14, %s2061_s21  }
 0xa7c   : > { %2031 = dma.done.wait (%p1749_p1), [#allocation5], 256  }
 0xa7d   : > { %2033 = vsyncadd (%p1749_p1), [#allocation5], 4294967040 }
 0xa7e PF: > { %p14_p4 = scmp.ge.s32.totalorder %s2135_s28, 4   ;;  %s2694_s15 = smov %s2040_s16 }
 0xa7f   : > { %s2695_s16 = smov %s2044_s17  ;;  %s2696_s17 = smov %s2150_s7 }
 0xa80   : > { %s2697_s18 = smov %s2135_s28  ;;  %16 = sbr.rel (!%p14_p4) target bundleno = 8 (0x8), region = 95 }
 0xa85   :  { %1565 = vsyncpa [#allocation4], 1 }
 0xa86   :  { %1567 = vsyncpa [#allocation4 + $0x1], 1 }
 0xa87   :  { %1568 = vsyncpa [#allocation7], 1 }
 0xa88   :  { %1569 = vsyncpa [#allocation5], 1 }
 0xa89   :  { %1571 = vsyncpa [#allocation5 + $0x1], 1 }

</bundles_post_ra>
